<compile_context>
chip_gen: v5e
topology: v5e:2x2
jax: 0.10.0
libtpu: 0.0.40
codegen_flags: <defaults>
</compile_context>

<pallas_src>
import functools
from typing import NamedTuple

import jax
import jax.numpy as jnp
from jax import lax
from jax.experimental import pallas as pl
from jax.experimental.pallas import tpu as pltpu


def _round_up(x, m):
    return (x + m - 1) // m * m


# Safe double-buffered VMEM budget on the smallest-VMEM target (v7x: 64 MiB/TC),
# leaving headroom for compiler scratch.
_VMEM_BUDGET = 44 * 1024 * 1024


class _Plan(NamedTuple):
    ins: int
    outs: int
    Kp: int        # padded K (contraction dim)
    Np: int        # padded N (output / vocab dim)
    tn: int        # N tile
    tk: int        # K tile (== Kp when full_k)
    full_k: bool   # True -> single K block, no accumulator
    tm_cap: int    # max M tile used for VMEM budgeting
    vmem_limit: int


def _vmem_limit_from(need):
    return max(min(int(need * 1.25) + (4 << 20), 56 << 20), 32 << 20)


def _n_tile_candidates(N):
    """Lane-dense N tiles with <=1% padding waste (waste = extra weight bytes)."""
    base = _round_up(N, 128)
    cands = []
    for tn in (1024, 512, 256, 128):
        Np = _round_up(N, tn)
        if tn != 128 and (Np - base) > 0.01 * Np:
            continue
        cands.append((tn, Np))
    return cands


def _make_plan(ins, outs, compute_itemsize):
    """Static tiling plan.  Depends only on (ins, outs, compute dtype)."""
    cbytes = compute_itemsize
    obytes = 4  # conservative (f32 output tile)
    K, N = ins, outs

    # --- preferred: collapse the K reduction axis (tk == Kp, no accumulator) ---
    Kp = _round_up(K, 128)
    for tm_cap in (512, 256, 128):
        for tn, Np in _n_tile_candidates(N):
            need = 2 * (tm_cap * Kp * cbytes + tn * Kp * cbytes + tm_cap * tn * obytes)
            if need <= _VMEM_BUDGET:
                return _Plan(ins, outs, Kp, Np, tn, Kp, True, tm_cap,
                             _vmem_limit_from(need))

    # --- fallback: K-tiled reduction with a resident f32 accumulator ---------
    for tk in (2048, 1024, 512):
        Kp = _round_up(K, tk)
        for tm_cap in (256, 128):
            for tn, Np in _n_tile_candidates(N):
                need = (2 * (tm_cap * tk * cbytes + tn * tk * cbytes
                             + tm_cap * tn * obytes)
                        + tm_cap * tn * 4)
                if need <= _VMEM_BUDGET:
                    return _Plan(ins, outs, Kp, Np, tn, tk, False, tm_cap,
                                 _vmem_limit_from(need))
    raise ValueError("could not find a VMEM-feasible tiling for Vhead")


def prepare_vhead_weight(weight, *, compute_dtype=None):
    """One-time weight preparation (do this OUTSIDE the per-token hot path).

    weight: PyTorch Linear layout [outs, ins].
    Returns (w_prepared, plan) with w_prepared of shape [Kp, Np] in compute
    dtype, pre-transposed and zero-padded to tile multiples.
    """
    outs, ins = weight.shape
    cdt = jnp.dtype(compute_dtype) if compute_dtype is not None else jnp.dtype(weight.dtype)
    plan = _make_plan(ins, outs, cdt.itemsize)

    w = jnp.asarray(weight).astype(cdt).T            # [ins, outs] = [K, N]
    if (plan.Kp, plan.Np) != (ins, outs):
        w = jnp.pad(w, ((0, plan.Kp - ins), (0, plan.Np - outs)))
    return w, plan


# --------------------------------------------------------------------------- #
# Kernels
# --------------------------------------------------------------------------- #
def _linear_full_k_kernel(x_ref, w_ref, o_ref, *, precision):
    # Single K block: result goes straight to the output tile (no VMEM
    # accumulator read-modify-write, no init/finalize branches).
    o_ref[...] = jnp.dot(
        x_ref[...], w_ref[...],
        preferred_element_type=jnp.float32,
        precision=precision,
    ).astype(o_ref.dtype)


def _linear_ktiled_kernel(x_ref, w_ref, o_ref, acc_ref, *, precision):
    @pl.when(pl.program_id(2) == 0)
    def _():
        acc_ref[...] = jnp.zeros_like(acc_ref)

    acc_ref[...] += jnp.dot(
        x_ref[...], w_ref[...],
        preferred_element_type=jnp.float32,
        precision=precision,
    )

    @pl.when(pl.program_id(2) == pl.num_programs(2) - 1)
    def _():
        o_ref[...] = acc_ref[...].astype(o_ref.dtype)


# --------------------------------------------------------------------------- #
# Forward
# --------------------------------------------------------------------------- #
@functools.partial(jax.jit, static_argnames=("plan",))
def vhead_forward(x, w_prepared, plan):
    """x: [..., ins] -> [..., outs].  w_prepared/plan from prepare_vhead_weight."""
    *lead, ins = x.shape
    assert ins == plan.ins, (ins, plan.ins)

    out_dtype = x.dtype                      # captured before compute cast
    compute_dtype = w_prepared.dtype
    x2d = x.reshape((-1, ins)).astype(compute_dtype)
    M = x2d.shape[0]

    tm = min(_round_up(M, 8), plan.tm_cap)
    Mp = _round_up(M, tm)
    if (Mp, plan.Kp) != (M, ins):
        x2d = jnp.pad(x2d, ((0, Mp - M), (0, plan.Kp - ins)))

    # f32 parity with PyTorch Linear; free since the kernel is bandwidth-bound.
    precision = lax.Precision.HIGHEST if compute_dtype == jnp.float32 else None

    if plan.full_k:
        grid = (Mp // tm, plan.Np // plan.tn)
        in_specs = [
            pl.BlockSpec((tm, plan.Kp), lambda i, j: (i, 0)),        # activations
            pl.BlockSpec((plan.Kp, plan.tn), lambda i, j: (0, j)),   # W pre-transposed [K, N]
        ]
        out_specs = pl.BlockSpec((tm, plan.tn), lambda i, j: (i, j))
        scratch_shapes = []
        kernel = functools.partial(_linear_full_k_kernel, precision=precision)
        dims = ("parallel", "parallel")
    else:
        grid = (Mp // tm, plan.Np // plan.tn, plan.Kp // plan.tk)
        in_specs = [
            pl.BlockSpec((tm, plan.tk), lambda i, j, k: (i, k)),
            pl.BlockSpec((plan.tk, plan.tn), lambda i, j, k: (k, j)),
        ]
        out_specs = pl.BlockSpec((tm, plan.tn), lambda i, j, k: (i, j))
        scratch_shapes = [pltpu.VMEM((tm, plan.tn), jnp.float32)]
        kernel = functools.partial(_linear_ktiled_kernel, precision=precision)
        dims = ("parallel", "parallel", "arbitrary")

    cost = pl.CostEstimate(
        flops=2 * Mp * plan.Np * plan.Kp,
        transcendentals=0,
        bytes_accessed=(
            Mp * plan.Kp * x2d.dtype.itemsize
            + plan.Kp * plan.Np * w_prepared.dtype.itemsize
            + Mp * plan.Np * jnp.dtype(out_dtype).itemsize
        ),
    )

    out2d = pl.pallas_call(
        kernel,
        out_shape=jax.ShapeDtypeStruct((Mp, plan.Np), out_dtype),
        grid_spec=pltpu.PrefetchScalarGridSpec(
            num_scalar_prefetch=0,
            grid=grid,
            in_specs=in_specs,
            out_specs=out_specs,
            scratch_shapes=scratch_shapes,
        ),
        compiler_params=pltpu.CompilerParams(
            dimension_semantics=dims,
            vmem_limit_bytes=plan.vmem_limit,
        ),
        cost_estimate=cost,
    )(x2d, w_prepared)

    out2d = out2d[:M, :plan.outs]
    return out2d.reshape((*lead, plan.outs))


# --------------------------------------------------------------------------- #
# Self-test (small shapes consistent with the module)
# --------------------------------------------------------------------------- #
if __name__ == "__main__":
    batch, seq, ins, outs = 2, 8, 256, 512

    key = jax.random.PRNGKey(0)
    kx, kw = jax.random.split(key)
    x = jax.random.normal(kx, (batch, seq, ins), dtype=jnp.float32)
    # PyTorch Linear layout [outs, ins].
    weight = jax.random.normal(kw, (outs, ins), dtype=jnp.float32) * (
        1.0 / jnp.sqrt(jnp.float32(ins))
    )

    # ---- f32 path (matches PyTorch module semantics) ----
    w_f32, plan_f32 = prepare_vhead_weight(weight)
    y = vhead_forward(x, w_f32, plan_f32)
    jax.block_until_ready(y)
    y_ref = jnp.einsum("bsi,oi->bso", x, weight, precision=lax.Precision.HIGHEST)
    assert y.shape == (batch, seq, outs)
    assert jnp.allclose(y, y_ref, atol=2e-3, rtol=2e-3), float(jnp.max(jnp.abs(y - y_ref)))

    # ---- bf16 weight-stream path (halves weight HBM traffic, f32 accumulation) ----
    w_bf16, plan_bf16 = prepare_vhead_weight(weight, compute_dtype=jnp.bfloat16)
    y_bf = vhead_forward(x, w_bf16, plan_bf16)
    jax.block_until_ready(y_bf)
    ref_bf = jnp.einsum(
        "bsi,oi->bso",
        x.astype(jnp.bfloat16),
        weight.astype(jnp.bfloat16),
        preferred_element_type=jnp.float32,
    ).astype(jnp.float32)
    assert jnp.allclose(y_bf, ref_bf, atol=2e-2, rtol=2e-2)

    # ---- unaligned dims exercise the zero-padding path ----
    ins2, outs2 = 200, 300
    x2 = jax.random.normal(kx, (3, ins2), dtype=jnp.float32)
    w2 = jax.random.normal(kw, (outs2, ins2), dtype=jnp.float32) * (
        1.0 / jnp.sqrt(jnp.float32(ins2))
    )
    w2p, plan2 = prepare_vhead_weight(w2)
    y2 = vhead_forward(x2, w2p, plan2)
    jax.block_until_ready(y2)
    ref2 = jnp.einsum("mi,oi->mo", x2, w2, precision=lax.Precision.HIGHEST)
    assert y2.shape == (3, outs2)
    assert jnp.allclose(y2, ref2, atol=2e-3, rtol=2e-3)

    print("KERNEL_OK")
</pallas_src>

<mosaic_0001>
module attributes {stable_mosaic.version = 11 : i64} {
  func.func @_linear_full_k_kernel(%arg0: i32, %arg1: i32, %arg2: memref<16x256xf32, #tpu.memory_space<vmem>>, %arg3: memref<256x512xf32, #tpu.memory_space<vmem>>, %arg4: memref<16x512xf32, #tpu.memory_space<vmem>>) attributes {dimension_semantics = [#tpu.dimension_semantics<parallel>, #tpu.dimension_semantics<parallel>], iteration_bounds = array<i64: 1, 1>, scalar_prefetch = 0 : i64, scratch_operands = 0 : i64, tpu.core_type = #tpu.core_type<tc>, window_params = [{transform_indices = @transform_0, window_bounds = array<i64: 16, 256>}, {transform_indices = @transform_1, window_bounds = array<i64: 256, 512>}, {transform_indices = @transform_2, window_bounds = array<i64: 16, 512>}]} {
    %c0 = arith.constant 0 : index
    %c0_0 = arith.constant 0 : index
    %0 = vector.load %arg2[%c0, %c0_0] : memref<16x256xf32, #tpu.memory_space<vmem>>, vector<16x256xf32>
    %c0_1 = arith.constant 0 : index
    %c0_2 = arith.constant 0 : index
    %1 = vector.load %arg3[%c0_1, %c0_2] : memref<256x512xf32, #tpu.memory_space<vmem>>, vector<256x512xf32>
    %cst = arith.constant dense<0.000000e+00> : vector<16x512xf32>
    %2 = tpu.matmul %0, %1, %cst {dimension_numbers = #tpu.dot_dimension_numbers<[1], [0], [0], [1], [0, 0, 1, 1], [], []>, precision = #tpu.contract_precision<fp32>} : vector<16x256xf32>, vector<256x512xf32>, vector<16x512xf32> -> vector<16x512xf32>
    %c0_3 = arith.constant 0 : index
    %c0_4 = arith.constant 0 : index
    %3 = vector.load %arg4[%c0_3, %c0_4] : memref<16x512xf32, #tpu.memory_space<vmem>>, vector<16x512xf32>
    tpu.vector_store %arg4[%c0_3, %c0_4], %2 {strides = array<i32>} : memref<16x512xf32, #tpu.memory_space<vmem>>, vector<16x512xf32>,
    return
  }
  func.func @transform_0(%arg0: i32, %arg1: i32) -> (i32, i32) {
    %c0_i32 = arith.constant 0 : i32
    %c0_i32_0 = arith.constant 0 : i32
    return %arg0, %c0_i32 : i32, i32
  }
  func.func @transform_1(%arg0: i32, %arg1: i32) -> (i32, i32) {
    %c0_i32 = arith.constant 0 : i32
    %c0_i32_0 = arith.constant 0 : i32
    return %c0_i32, %arg1 : i32, i32
  }
  func.func @transform_2(%arg0: i32, %arg1: i32) -> (i32, i32) {
    %c0_i32 = arith.constant 0 : i32
    return %arg0, %arg1 : i32, i32
  }
}

</mosaic_0001>

<bundles_post_ra>
// kernel: vhead_forward.1
= control target key start
LH: loop header
LB: loop body
LE: loop exit
PB: predicated region body
PF: predicated region fallthrough
CT: control target
= control target key end

     0   :  { %7 = vsyncpa [#allocation3], 0  ;;  %s5396_s0 = inlined_call_operand.hbm [shape: f32[16,256], index: 0, kind: input, shape index: {}]   ;;  %s5397_s1 = inlined_call_operand.hbm [shape: f32[256,512], index: 1, kind: input, shape index: {}]   ;;  %s5398_s2 = inlined_call_operand.hbm [shape: f32[16,512], index: 2, kind: output, shape index: {}]  }
   0x1   :  { %8 = vsyncpa [#allocation6], 0 }
   0x2   :  { %9 = vsyncpa [#allocation4], 0  ;;  %s14_s11 = sshll.u32 %s5396_s0, 4  ;;  %s3265_s12 = smov [#allocation2]   ;;  %s15_s11 = int_to_ptr.hbm [resolvable:$true] %s14_s11 }
   0x3   :  { %s16_s13 = sshll.u32 %s3265_s12, 4  ;;  %s27_s16 = sshll.u32 %s5397_s1, 4  ;;  %s17_s13 = int_to_ptr.vmem [resolvable:$true] %s16_s13  ;;  %s28_s16 = int_to_ptr.hbm [resolvable:$true] %s27_s16 }
   0x4   :  { %s3266_s17 = smov 256   ;;  %s3267_s18 = smov 16  }
   0x5   :  { %22 = dma.hbm_to_vmem [thread:$0]  %s15_s11, 512, %s17_s13, [#allocation3], %s3266_s17, %s3266_s17, %s3267_s18  }
   0x6   :  { %s3268_s19 = smov [#allocation5]   ;;  %s3269_s21 = smov 512  }
   0x7   :  { %s29_s20 = sshll.u32 %s3268_s19, 4  ;;  %s3270_s22 = smov 32   ;;  %s30_s20 = int_to_ptr.vmem [resolvable:$true] %s29_s20 }
   0x8   :  { %35 = dma.hbm_to_vmem [thread:$0]  %s28_s16, 16384, %s30_s20, [#allocation6], %s3269_s21, %s3269_s21, %s3270_s22  }
   0x9   :  { %3259 = dma.done.wait [#allocation3], 512  }
   0xa   :  { %3260 = vsyncadd [#allocation3], 4294966784 }
   0xb   :  { %3261 = dma.done.wait [#allocation6], 16384  }
   0xc   :  { %3262 = vsyncadd [#allocation6], 4294950912  ;;  %v108_v0 = vld [vmem:[#allocation5 + $0x1e0] sm:$0xff]  ;;  %s3271_s0 = smov [#allocation7]   ;;  %s3166_s25 = sshll.u32 %s5398_s2, 4  ;;  %s3167_s25 = int_to_ptr.hbm [resolvable:$true] %s3166_s25 }
   0xd   :  { %v104_v1 = vld [vmem:[#allocation5 + $0x1c0] sm:$0xff]  ;;  %v3296_v3 = vand.u32 4294901760, %v108_v0  ;;  %s3164_s1 = sshll.u32 %s3271_s0, 4  ;;  %s3165_s1 = int_to_ptr.vmem [resolvable:$true] %s3164_s1 }
   0xe   :  { %v100_v2 = vld [vmem:[#allocation5 + $0x1a0] sm:$0xff]  ;;  %v3298_v4 = vand.u32 4294901760, %v104_v1 }
   0xf   :  { %v3300_v5 = vand.u32 4294901760, %v100_v2  ;;  %v96_v6 = vld [vmem:[#allocation5 + $0x180] sm:$0xff]  ;;  %177 = vmatpush.msra.mxu0 %v3296_v3  ;;  %v3310_v14 = vsub.f32 %v108_v0, %v3296_v3  ;;  %390 = vmatpush.msra.mxu3 %v3296_v3 }
  0x10   :  { %v92_v7 = vld [vmem:[#allocation5 + $0x160] sm:$0xff]  ;;  %v3302_v9 = vand.u32 4294901760, %v96_v6  ;;  %v3313_v15 = vsub.f32 %v104_v1, %v3298_v4 }
  0x11   :  { %v88_v8 = vld [vmem:[#allocation5 + $0x140] sm:$0xff]  ;;  %v3304_v10 = vand.u32 4294901760, %v92_v7  ;;  %v3317_v16 = vsub.f32 %v100_v2, %v3300_v5  ;;  %179 = vmatpush.msra.mxu0 %v3298_v4  ;;  %332 = vmatpush.msra.mxu2 %v3310_v14  ;;  %v227_v22 = vand.u32 4294901760, %v3310_v14 }
  0x12   :  { %v3306_v11 = vand.u32 4294901760, %v88_v8  ;;  %v84_v12 = vld [vmem:[#allocation5 + $0x120] sm:$0xff]  ;;  %v3322_v19 = vsub.f32 %v96_v6, %v3302_v9  ;;  %v5415_v23 = vand.u32 4294901760, %v3313_v15  ;;  %392 = vmatpush.msra.mxu3 %v3298_v4 }
  0x13   :  { %v80_v13 = vld [vmem:[#allocation5 + $0x100] sm:$0xff]  ;;  %v3319_v17 = vand.u32 4294901760, %v84_v12  ;;  %v3325_v20 = vsub.f32 %v92_v7, %v3304_v10  ;;  %v5412_v24 = vand.u32 4294901760, %v3317_v16  ;;  %181 = vmatpush.msra.mxu0 %v3300_v5  ;;  %335 = vmatpush.msra.mxu2 %v3313_v15  ;;  %v228_v30 = vsub.f32 %v3310_v14, %v227_v22 }
  0x14   :  { %v76_v18 = vld [vmem:[#allocation5 + $0xe0] sm:$0xff]  ;;  %v3327_v21 = vand.u32 4294901760, %v80_v13  ;;  %v3335_v25 = vsub.f32 %v88_v8, %v3306_v11  ;;  %v5411_v27 = vand.u32 4294901760, %v3322_v19  ;;  %v234_v31 = vsub.f32 %v3313_v15, %v5415_v23  ;;  %394 = vmatpush.msra.mxu3 %v3300_v5 }
  0x15   :  { %v72_v26 = vld [vmem:[#allocation5 + $0xc0] sm:$0xff]  ;;  %v3339_v28 = vand.u32 4294901760, %v76_v18  ;;  %v3342_v29 = vsub.f32 %v84_v12, %v3319_v17  ;;  %v240_v32 = vsub.f32 %v3317_v16, %v5412_v24  ;;  %v5408_v33 = vand.u32 4294901760, %v3325_v20  ;;  %183 = vmatpush.msra.mxu0 %v3302_v9  ;;  %338 = vmatpush.msra.mxu2 %v3317_v16 }
  0x16   :  { %v3357_v34 = vand.u32 4294901760, %v72_v26  ;;  %v3360_v35 = vsub.f32 %v80_v13, %v3327_v21  ;;  %v68_v36 = vld [vmem:[#allocation5 + $0xa0] sm:$0xff]  ;;  %v229_v37 = vand.u32 4294901760, %v228_v30  ;;  %v235_v38 = vand.u32 4294901760, %v234_v31  ;;  %396 = vmatpush.msra.mxu3 %v3302_v9 }
  0x17   :  { %v246_v39 = vsub.f32 %v3322_v19, %v5411_v27  ;;  %v5407_v40 = vand.u32 4294901760, %v3335_v25  ;;  %v5405_v41 = vand.u32 4294901760, %v3342_v29  ;;  %v64_v42 = vld [vmem:[#allocation5 + $0x80] sm:$0xff]  ;;  %185 = vmatpush.msra.mxu0 %v3304_v10  ;;  %v241_v43 = vand.u32 4294901760, %v240_v32  ;;  %341 = vmatpush.msra.mxu2 %v3322_v19 }
  0x18   :  { %230 = vmatpush.msra.mxu1 %v229_v37  ;;  %v252_v44 = vsub.f32 %v3325_v20, %v5408_v33  ;;  %v3374_v45 = vand.u32 4294901760, %v68_v36  ;;  %v3377_v46 = vsub.f32 %v76_v18, %v3339_v28  ;;  %398 = vmatpush.msra.mxu3 %v3304_v10  ;;  %v5404_v47 = vand.u32 4294901760, %v3360_v35  ;;  %v60_v48 = vld [vmem:[#allocation5 + $0x60] sm:$0xff] }
  0x19   :  { %187 = vmatpush.msra.mxu0 %v3306_v11  ;;  %v247_v49 = vand.u32 4294901760, %v246_v39  ;;  %v258_v50 = vsub.f32 %v3335_v25, %v5407_v40  ;;  %v3386_v51 = vand.u32 4294901760, %v64_v42  ;;  %v3389_v52 = vsub.f32 %v72_v26, %v3357_v34  ;;  %344 = vmatpush.msra.mxu2 %v3325_v20  ;;  %v56_v54 = vld [vmem:[#allocation5 + $0x40] sm:$0xff] }
  0x1a   :  { %236 = vmatpush.msra.mxu1 %v235_v38  ;;  %400 = vmatpush.msra.mxu3 %v3306_v11  ;;  %v264_v53 = vsub.f32 %v3342_v29, %v5405_v41  ;;  %v253_v55 = vand.u32 4294901760, %v252_v44  ;;  %v3397_v56 = vand.u32 4294901760, %v60_v48  ;;  %v5402_v57 = vand.u32 4294901760, %v3377_v46  ;;  %v172_v59 = vld [vmem:[#allocation5 + $0x3e0] sm:$0xff] }
  0x1b   :  { %189 = vmatpush.msra.mxu0 %v3319_v17  ;;  %v3401_v58 = vsub.f32 %v68_v36, %v3374_v45  ;;  %347 = vmatpush.msra.mxu2 %v3335_v25  ;;  %v270_v60 = vsub.f32 %v3360_v35, %v5404_v47  ;;  %v52_v61 = vld [vmem:[#allocation5 + $0x20] sm:$0xff]  ;;  %v259_v62 = vand.u32 4294901760, %v258_v50  ;;  %v3409_v63 = vand.u32 4294901760, %v56_v54 }
  0x1c   :  { %242 = vmatpush.msra.mxu1 %v241_v43  ;;  %402 = vmatpush.msra.mxu3 %v3319_v17  ;;  %v5401_v0 = vand.u32 4294901760, %v3389_v52  ;;  %v3413_v1 = vsub.f32 %v64_v42, %v3386_v51  ;;  %v168_v2 = vld [vmem:[#allocation5 + $0x3c0] sm:$0xff]  ;;  %v265_v6 = vand.u32 4294901760, %v264_v53  ;;  %v3417_v8 = vand.u32 4294901760, %v172_v59 }
  0x1d   :  { %191 = vmatpush.msra.mxu0 %v3327_v21  ;;  %350 = vmatpush.msra.mxu2 %v3342_v29  ;;  %v48_v7 = vld [vmem:[#allocation5] sm:$0xff]  ;;  %v276_v12 = vsub.f32 %v3377_v46, %v5402_v57  ;;  %v3423_v13 = vand.u32 4294901760, %v52_v61  ;;  %v5400_v18 = vand.u32 4294901760, %v3401_v58  ;;  %v3427_v26 = vsub.f32 %v60_v48, %v3397_v56 }
  0x1e   :  { %248 = vmatpush.msra.mxu1 %v247_v49  ;;  %404 = vmatpush.msra.mxu3 %v3327_v21  ;;  %v164_v30 = vld [vmem:[#allocation5 + $0x3a0] sm:$0xff]  ;;  %v271_v31 = vand.u32 4294901760, %v270_v60  ;;  %v3431_v32 = vand.u32 4294901760, %v168_v2  ;;  %v282_v36 = vsub.f32 %v3389_v52, %v5401_v0  ;;  %v3437_v37 = vand.u32 4294901760, %v48_v7 }
  0x1f   :  { %193 = vmatpush.msra.mxu0 %v3339_v28  ;;  %353 = vmatpush.msra.mxu2 %v3360_v35  ;;  %v5399_v38 = vand.u32 4294901760, %v3413_v1  ;;  %v3441_v39 = vsub.f32 %v56_v54, %v3409_v63  ;;  %v160_v42 = vld [vmem:[#allocation5 + $0x380] sm:$0xff]  ;;  %v3446_v43 = vsub.f32 %v172_v59, %v3417_v8  ;;  %v3448_v44 = vand.u32 4294901760, %v164_v30 }
  0x20   :  { %254 = vmatpush.msra.mxu1 %v253_v55  ;;  %406 = vmatpush.msra.mxu3 %v3339_v28  ;;  %5501 = vst [vmem:[#allocation11_spill] sm:$0xff] %v3437_v37  ;;  %v277_v48 = vand.u32 4294901760, %v276_v12  ;;  %v288_v49 = vsub.f32 %v3401_v58, %v5400_v18  ;;  %v5403_v50 = vand.u32 4294901760, %v3427_v26  ;;  %v3456_v53 = vsub.f32 %v52_v61, %v3423_v13  ;;  %v156_v59 = vld [vmem:[#allocation5 + $0x360] sm:$0xff] }
  0x21   :  { %195 = vmatpush.msra.mxu0 %v3357_v34  ;;  %356 = vmatpush.msra.mxu2 %v3377_v46  ;;  %v3461_v54 = vsub.f32 %v168_v2, %v3431_v32  ;;  %v3463_v55 = vand.u32 4294901760, %v160_v42  ;;  %v283_v60 = vand.u32 4294901760, %v282_v36  ;;  %v5406_v61 = vand.u32 4294901760, %v3441_v39  ;;  %v148_v57 = vld [vmem:[#allocation5 + $0x320] sm:$0xff] }
  0x22   :  { %260 = vmatpush.msra.mxu1 %v259_v62  ;;  %408 = vmatpush.msra.mxu3 %v3357_v34  ;;  %v294_v62 = vsub.f32 %v3413_v1, %v5399_v38  ;;  %v5409_v2 = vand.u32 4294901760, %v3446_v43  ;;  %v3477_v12 = vsub.f32 %v164_v30, %v3448_v44  ;;  %v289_v36 = vand.u32 4294901760, %v288_v49 }
  0x23   :  { %197 = vmatpush.msra.mxu0 %v3374_v45  ;;  %359 = vmatpush.msra.mxu2 %v3389_v52  ;;  %v300_v38 = vsub.f32 %v3427_v26, %v5403_v50  ;;  %v3484_v18 = vand.u32 4294901760, %v156_v59  ;;  %v5413_v30 = vand.u32 4294901760, %v3461_v54  ;;  %v3490_v0 = vsub.f32 %v160_v42, %v3463_v55 }
  0x24   :  { %266 = vmatpush.msra.mxu1 %v265_v6  ;;  %410 = vmatpush.msra.mxu3 %v3374_v45  ;;  %v3471_v6 = vsub.f32 %v48_v7, %v3437_v37  ;;  %v5410_v7 = vand.u32 4294901760, %v3456_v53  ;;  %v306_v49 = vsub.f32 %v3441_v39, %v5406_v61  ;;  %v600_v42 = vsub.f32 %v3446_v43, %v5409_v2 }
  0x25   :  { %199 = vmatpush.msra.mxu0 %v3386_v51  ;;  %362 = vmatpush.msra.mxu2 %v3401_v58  ;;  %v5416_v41 = vand.u32 4294901760, %v3477_v12  ;;  %v3510_v40 = vsub.f32 %v156_v59, %v3484_v18  ;;  %v3512_v33 = vand.u32 4294901760, %v148_v57  ;;  %v606_v2 = vsub.f32 %v3461_v54, %v5413_v30 }
  0x26   :  { %272 = vmatpush.msra.mxu1 %v271_v31  ;;  %412 = vmatpush.msra.mxu3 %v3386_v51  ;;  %v152_v31 = vld [vmem:[#allocation5 + $0x340] sm:$0xff]  ;;  %v5414_v50 = vand.u32 4294901760, %v3471_v6  ;;  %v312_v61 = vsub.f32 %v3456_v53, %v5410_v7  ;;  %v307_v7 = vand.u32 4294901760, %v306_v49  ;;  %v601_v30 = vand.u32 4294901760, %v600_v42 }
  0x27   :  { %201 = vmatpush.msra.mxu0 %v3397_v56  ;;  %365 = vmatpush.msra.mxu2 %v3413_v1  ;;  %v3497_v47 = vand.u32 4294901760, %v152_v31  ;;  %v136_v49 = vld [vmem:[#allocation5 + $0x2c0] sm:$0xff]  ;;  %v5502_v14 = vand.u32 4294901760, %v3313_v15  ;;  %v5503_v42 = vand.u32 4294901760, %v3490_v0  ;;  %v5504_v15 = vand.u32 4294901760, %v3317_v16 }
  0x28   :  { %278 = vmatpush.msra.mxu1 %v277_v48  ;;  %414 = vmatpush.msra.mxu3 %v3397_v56  ;;  %v295_v48 = vand.u32 4294901760, %v294_v62  ;;  %v301_v62 = vand.u32 4294901760, %v300_v38  ;;  %v140_v38 = vld [vmem:[#allocation5 + $0x2e0] sm:$0xff]  ;;  %v318_v59 = vsub.f32 %v3471_v6, %v5414_v50  ;;  %v3538_v50 = vsub.f32 %v148_v57, %v3512_v33 }
  0x29   :  { %203 = vmatpush.msra.mxu0 %v3409_v63  ;;  %368 = vmatpush.msra.mxu2 %v3427_v26  ;;  %v3525_v27 = vsub.f32 %v152_v31, %v3497_v47  ;;  %v3540_v23 = vand.u32 4294901760, %v140_v38  ;;  %v5506_v16 = vand.u32 4294901760, %v3322_v19  ;;  %v5509_v19 = vand.u32 4294901760, %v3325_v20 }
  0x2a   :  { %284 = vmatpush.msra.mxu1 %v283_v60  ;;  %416 = vmatpush.msra.mxu3 %v3409_v63  ;;  %v144_v60 = vld [vmem:[#allocation5 + $0x300] sm:$0xff] }
  0x2b   :  { %205 = vmatpush.msra.mxu0 %v3423_v13  ;;  %371 = vmatpush.msra.mxu2 %v3441_v39  ;;  %v3527_v24 = vand.u32 4294901760, %v144_v60 }
  0x2c   :  { %290 = vmatpush.msra.mxu1 %v289_v36  ;;  %418 = vmatpush.msra.mxu3 %v3423_v13  ;;  %v313_v36 = vand.u32 4294901760, %v312_v61  ;;  %v132_v61 = vld [vmem:[#allocation5 + $0x2a0] sm:$0xff] }
  0x2d   :  { %207 = vmatpush.msra.mxu0 %v3437_v37  ;;  %374 = vmatpush.msra.mxu2 %v3456_v53  ;;  %v3551_v31 = vsub.f32 %v144_v60, %v3527_v24  ;;  %v3563_v60 = vsub.f32 %v140_v38, %v3540_v23  ;;  %v3565_v57 = vand.u32 4294901760, %v132_v61 }
  0x2e   :  { %296 = vmatpush.msra.mxu1 %v295_v48  ;;  %v612_v48 = vsub.f32 %v3477_v12, %v5416_v41  ;;  %420 = vmatpush.msra.mxu3 %v3437_v37  ;;  %v319_v41 = vand.u32 4294901760, %v318_v59  ;;  %v3553_v37 = vand.u32 4294901760, %v136_v49 }
  0x2f   :  { %437 = vmatpush.msrb.mxu0 %v227_v22  ;;  %377 = vmatpush.msra.mxu2 %v3471_v6  ;;  %v607_v22 = vand.u32 4294901760, %v606_v2 }
  0x30   :  { %302 = vmatpush.msra.mxu1 %v301_v62  ;;  %v618_v62 = vsub.f32 %v3490_v0, %v5503_v42  ;;  %602 = vmatpush.msrb.mxu3 %v601_v30  ;;  %v613_v2 = vand.u32 4294901760, %v612_v48  ;;  %v128_v42 = vld [vmem:[#allocation5 + $0x280] sm:$0xff] }
  0x31   :  { %441 = vmatpush.msrb.mxu0 %v5502_v14  ;;  %549 = vmatpush.msrb.mxu2 %v3417_v8  ;;  %v44_v14 = vld [vmem:[#allocation2] sm:$0xff] }
  0x32   :  { %308 = vmatpush.msra.mxu1 %v307_v7  ;;  %v5505_v7 = vand.u32 4294901760, %v3510_v40  ;;  %608 = vmatpush.msrb.mxu3 %v607_v22  ;;  %v619_v30 = vand.u32 4294901760, %v618_v62  ;;  %v3577_v38 = vand.u32 4294901760, %v44_v14  ;;  %v5510_v22 = vand.u32 4294901760, %v3538_v50 }
  0x33   :  { %445 = vmatpush.msrb.mxu0 %v5504_v15  ;;  %551 = vmatpush.msrb.mxu2 %v3431_v32  ;;  %v5511_v15 = vand.u32 4294901760, %v3335_v25  ;;  %v5513_v25 = vand.u32 4294901760, %v3342_v29 }
  0x34   :  { %314 = vmatpush.msra.mxu1 %v313_v36  ;;  %v624_v59 = vsub.f32 %v3510_v40, %v5505_v7  ;;  %v5507_v36 = vand.u32 4294901760, %v3525_v27  ;;  %v3575_v7 = vsub.f32 %v136_v49, %v3553_v37  ;;  %5508 = vst [vmem:[#allocation12_spill] sm:$0xff] %v3577_v38  ;;  %614 = vmatpush.msrb.mxu3 %v613_v2  ;;  %v5512_v2 = vand.u32 4294901760, %v3551_v31 }
  0x35   :  { %449 = vmatpush.msrb.mxu0 %v5506_v16  ;;  %553 = vmatpush.msrb.mxu2 %v3448_v44  ;;  %v636_v62 = vsub.f32 %v3538_v50, %v5510_v22  ;;  %v5419_v16 = vand.u32 4294901760, %v3563_v60  ;;  %v3588_v49 = vsub.f32 %v132_v61, %v3565_v57  ;;  %v3601_v61 = vsub.f32 %v44_v14, %v3577_v38  ;;  %v120_v22 = vld [vmem:[#allocation5 + $0x240] sm:$0xff] }
  0x36   :  { %320 = vmatpush.msra.mxu1 %v319_v41  ;;  %v630_v48 = vsub.f32 %v3525_v27, %v5507_v36  ;;  %v625_v41 = vand.u32 4294901760, %v624_v59  ;;  %v124_v36 = vld [vmem:[#allocation5 + $0x260] sm:$0xff]  ;;  %620 = vmatpush.msrb.mxu3 %v619_v30  ;;  %v642_v59 = vsub.f32 %v3551_v31, %v5512_v2  ;;  %v5514_v14 = vand.u32 4294901760, %v3360_v35 }
  0x37   :  { %453 = vmatpush.msrb.mxu0 %v5509_v19  ;;  %555 = vmatpush.msrb.mxu2 %v3463_v55  ;;  %v5418_v19 = vand.u32 4294901760, %v3575_v7  ;;  %v637_v30 = vand.u32 4294901760, %v636_v62  ;;  %v116_v2 = vld [vmem:[#allocation5 + $0x220] sm:$0xff]  ;;  %v3626_v35 = vand.u32 4294901760, %v3601_v61 }
  0x38   :  { %508 = vmatpush.msrb.mxu1 %v3296_v3  ;;  %v3593_v3 = vand.u32 4294901760, %v128_v42  ;;  %v631_v20 = vand.u32 4294901760, %v630_v48  ;;  %626 = vmatpush.msrb.mxu3 %v625_v41  ;;  %v648_v48 = vsub.f32 %v3563_v60, %v5419_v16  ;;  %v643_v41 = vand.u32 4294901760, %v642_v59  ;;  %v112_v16 = vld [vmem:[#allocation5 + $0x200] sm:$0xff] }
  0x39   :  { %457 = vmatpush.msrb.mxu0 %v5511_v15  ;;  %557 = vmatpush.msrb.mxu2 %v3484_v18  ;;  %v659_v15 = vand.u32 4294901760, %v3588_v49  ;;  %v654_v62 = vsub.f32 %v3575_v7, %v5418_v19 }
  0x3a   :  { %510 = vmatpush.msrb.mxu1 %v3298_v4  ;;  %v3606_v4 = vand.u32 4294901760, %v124_v36  ;;  %v3617_v29 = vsub.f32 %v128_v42, %v3593_v3  ;;  %632 = vmatpush.msrb.mxu3 %v631_v20  ;;  %v649_v20 = vand.u32 4294901760, %v648_v48  ;;  %v211_v48 = vsub.f32 %v3601_v61, %v3626_v35 }
  0x3b   :  { %461 = vmatpush.msrb.mxu0 %v5513_v25  ;;  %559 = vmatpush.msrb.mxu2 %v3497_v47  ;;  %v46_v25 = vld [vmem:[#allocation2 + $0x10] sm:$0xff]  ;;  %v660_v59 = vsub.f32 %v3588_v49, %v659_v15 }
  0x3c   :  { %512 = vmatpush.msrb.mxu1 %v3300_v5  ;;  %v3619_v5 = vand.u32 4294901760, %v120_v22  ;;  %v3632_v42 = vsub.f32 %v124_v36, %v3606_v4  ;;  %638 = vmatpush.msrb.mxu3 %v637_v30  ;;  %v3640_v19 = vand.u32 4294901760, %v46_v25  ;;  %v655_v30 = vand.u32 4294901760, %v654_v62 }
  0x3d   :  { %465 = vmatpush.msrb.mxu0 %v5514_v14  ;;  %561 = vmatpush.msrb.mxu2 %v3512_v33  ;;  %v3638_v14 = vand.u32 4294901760, %v116_v2  ;;  %v5520_v62 = vand.u32 4294901760, %v3413_v1 }
  0x3e   :  { %514 = vmatpush.msrb.mxu1 %v3302_v9  ;;  %v5515_v9 = vand.u32 4294901760, %v3377_v46  ;;  %5516 = vst [vmem:[#allocation13_spill] sm:$0xff] %v3640_v19  ;;  %v5517_v46 = vand.u32 4294901760, %v3389_v52  ;;  %v3647_v36 = vsub.f32 %v120_v22, %v3619_v5  ;;  %644 = vmatpush.msrb.mxu3 %v643_v41  ;;  %v671_v52 = vand.u32 4294901760, %v3632_v42 }
  0x3f   :  { %563 = vmatpush.msrb.mxu2 %v3527_v24  ;;  %v661_v22 = vand.u32 4294901760, %v660_v59  ;;  %v3663_v41 = vsub.f32 %v116_v2, %v3638_v14  ;;  %v5521_v2 = vand.u32 4294901760, %v3427_v26  ;;  %v5524_v26 = vand.u32 4294901760, %v3441_v39  ;;  %424 = vmatmul.f32.vlgmr.msra.gmra.mxu3 %v3626_v35 }
  0x40   :  { %469 = vmatpush.msrb.mxu0 %v5515_v9  ;;  %516 = vmatpush.msrb.mxu1 %v3304_v10  ;;  %v665_v10 = vand.u32 4294901760, %v3617_v29  ;;  %v5518_v9 = vand.u32 4294901760, %v3401_v58  ;;  %v677_v58 = vand.u32 4294901760, %v3647_v36 }
  0x41   :  { %565 = vmatpush.msrb.mxu2 %v3540_v23  ;;  %650 = vmatpush.msrb.mxu3 %v649_v20  ;;  %v683_v20 = vand.u32 4294901760, %v3663_v41 }
  0x42   :  { %473 = vmatpush.msrb.mxu0 %v5517_v46  ;;  %518 = vmatpush.msrb.mxu1 %v3306_v11  ;;  %v3656_v11 = vand.u32 4294901760, %v112_v16  ;;  %v3660_v46 = vsub.f32 %v46_v25, %v3640_v19  ;;  %v3673_v25 = vand.u32 4294901760, %v211_v48  ;;  %v5525_v48 = vand.u32 4294901760, %v3456_v53 }
  0x43   :  { %567 = vmatpush.msrb.mxu2 %v3553_v37  ;;  %656 = vmatpush.msrb.mxu3 %v655_v30 }
  0x44   :  { %477 = vmatpush.msrb.mxu0 %v5518_v9  ;;  %520 = vmatpush.msrb.mxu1 %v3319_v17  ;;  %5519 = vst [vmem:[#allocation14_spill] sm:$0xff] %v3660_v46  ;;  %v666_v17 = vsub.f32 %v3617_v29, %v665_v10  ;;  %v45_v9 = vld [vmem:[#allocation2 + $0x8] sm:$0xff]  ;;  %v3682_v1 = vsub.f32 %v112_v16, %v3656_v11  ;;  %v3687_v59 = vand.u32 4294901760, %v3660_v46 }
  0x45   :  { %569 = vmatpush.msrb.mxu2 %v3565_v57  ;;  %662 = vmatpush.msrb.mxu3 %v661_v22  ;;  %v3689_v30 = vand.u32 4294901760, %v45_v9  ;;  %v678_v16 = vsub.f32 %v3647_v36, %v677_v58 }
  0x46   :  { %481 = vmatpush.msrb.mxu0 %v5520_v62  ;;  %522 = vmatpush.msrb.mxu1 %v3327_v21  ;;  %v672_v21 = vsub.f32 %v3632_v42, %v671_v52  ;;  %5522 = vst [vmem:[#allocation15_spill] sm:$0xff] %v3687_v59  ;;  %v689_v39 = vand.u32 4294901760, %v3682_v1  ;;  %v219_v62 = vsub.f32 %v3660_v46, %v3687_v59 }
  0x47   :  { %380 = vmatmul.f32.vlgmr.msra.gmra.mxu2 %v3601_v61  ;;  %5523 = vst [vmem:[#allocation16_spill] sm:$0xff] %v3689_v30  ;;  %213 = vmatmul.f32.vlgmr.msra.gmra.mxu0 %v3673_v25  ;;  %v679_v53 = vand.u32 4294901760, %v678_v16  ;;  %v5533_v16 = vld [vmem:[#allocation11_spill] sm:$0xff] }
  0x48   :  { %485 = vmatpush.msrb.mxu0 %v5521_v2  ;;  %524 = vmatpush.msrb.mxu1 %v3339_v28  ;;  %v667_v28 = vand.u32 4294901760, %v666_v17  ;;  %v673_v22 = vand.u32 4294901760, %v672_v21  ;;  %v3711_v17 = vsub.f32 %v45_v9, %v3689_v30  ;;  %v5527_v2 = vand.u32 4294901760, %v3471_v6 }
  0x49   :  { %571 = vmatpush.msrb.mxu2 %v3593_v3  ;;  %322 = vmatmul.f32.vlgmr.msra.gmra.mxu1 %v3577_v38  ;;  %v3723_v21 = vand.u32 4294901760, %v219_v62  ;;  %v5530_v6 = vand.u32 4294901760, %v3446_v43  ;;  %v77_v62 = vld [vmem:[#allocation5 + $0xe8] sm:$0xff] }
  0x4a   :  { %489 = vmatpush.msrb.mxu0 %v5524_v26  ;;  %526 = vmatpush.msrb.mxu1 %v3357_v34  ;;  %v684_v34 = vsub.f32 %v3663_v41, %v683_v20  ;;  %5526 = vst [vmem:[#allocation17_spill] sm:$0xff] %v3711_v17  ;;  %v3726_v26 = vand.u32 4294901760, %v3711_v17 }
  0x4b   :  { %573 = vmatpush.msrb.mxu2 %v3606_v4  ;;  %668 = vmatpush.msrb.mxu3 %v667_v28  ;;  %5528 = vst [vmem:[#allocation18_spill] sm:$0xff] %v3723_v21 }
  0x4c   :  { %493 = vmatpush.msrb.mxu0 %v5525_v48  ;;  %528 = vmatpush.msrb.mxu1 %v3374_v45  ;;  %v690_v45 = vsub.f32 %v3682_v1, %v689_v39  ;;  %v685_v9 = vand.u32 4294901760, %v684_v34  ;;  %5529 = vst [vmem:[#allocation19_spill] sm:$0xff] %v3726_v26  ;;  %v47_v48 = vld [vmem:[#allocation2 + $0x18] sm:$0xff]  ;;  %v81_v34 = vld [vmem:[#allocation5 + $0x108] sm:$0xff] }
  0x4d   :  { %575 = vmatpush.msrb.mxu2 %v3619_v5  ;;  %674 = vmatpush.msrb.mxu3 %v673_v22 }
  0x4e   :  { %497 = vmatpush.msrb.mxu0 %v5527_v2  ;;  %530 = vmatpush.msrb.mxu1 %v3386_v51  ;;  %v691_v51 = vand.u32 4294901760, %v690_v45  ;;  %v73_v45 = vld [vmem:[#allocation5 + $0xc8] sm:$0xff] }
  0x4f   :  { %577 = vmatpush.msrb.mxu2 %v3638_v14  ;;  %680 = vmatpush.msrb.mxu3 %v679_v53 }
  0x50   :  { %704 = vmatpush.msra.mxu0 %v3446_v43  ;;  %532 = vmatpush.msrb.mxu1 %v3397_v56  ;;  %v583_v56 = vsub.f32 %v3711_v17, %v3726_v26  ;;  %v3756_v43 = vand.u32 4294901760, %v47_v48 }
  0x51   :  { %385 = vmatmul.f32.gmra.mxu2 %v3660_v46  ;;  %686 = vmatpush.msrb.mxu3 %v685_v9 }
  0x52   :  { %707 = vmatpush.msra.mxu0 %v3461_v54  ;;  %534 = vmatpush.msrb.mxu1 %v3409_v63  ;;  %v5531_v63 = vand.u32 4294901760, %v3461_v54  ;;  %v3745_v28 = vand.u32 4294901760, %v583_v56  ;;  %5535 = vst [vmem:[#allocation11_spill] sm:$0xff] %v3756_v43  ;;  %v5536_v54 = vand.u32 4294901760, %v3490_v0 }
  0x53   :  { %579 = vmatpush.msrb.mxu2 %v3656_v11  ;;  %221 = vmatmul.f32.gmra.mxu0 %v3723_v21 }
  0x54   :  { %430 = vmatmul.f32.gmra.mxu3 %v3687_v59  ;;  %710 = vmatpush.msra.mxu0 %v3477_v12  ;;  %5532 = vst [vmem:[#allocation20_spill] sm:$0xff] %v3745_v28  ;;  %v141_v59 = vld [vmem:[#allocation5 + $0x2e8] sm:$0xff] }
  0x55   :  { %809 = vmatpush.msra.mxu2 %v5530_v6  ;;  %536 = vmatpush.msrb.mxu1 %v3423_v13  ;;  %v5534_v13 = vand.u32 4294901760, %v3477_v12  ;;  %v3769_v12 = vsub.f32 %v47_v48, %v3756_v43 }
  0x56   :  { %692 = vmatpush.msrb.mxu3 %v691_v51  ;;  %326 = vmatmul.f32.gmra.mxu1 %v3640_v19 }
  0x57   :  { %713 = vmatpush.msra.mxu0 %v3490_v0  ;;  %813 = vmatpush.msra.mxu2 %v5531_v63  ;;  %5538 = vst [vmem:[#allocation21_spill] sm:$0xff] %v3769_v12  ;;  %v5539_v0 = vand.u32 4294901760, %v3525_v27 }
  0x58   :  { %880 = vmatpush.msra.mxu3 %v3417_v8  ;;  %538 = vmatpush.msrb.mxu1 %v5533_v16  ;;  %v3904_v16 = vand.u32 4294901760, %v73_v45 }
  0x59   :  { %716 = vmatpush.msra.mxu0 %v3510_v40  ;;  %817 = vmatpush.msra.mxu2 %v5534_v13  ;;  %v69_v13 = vld [vmem:[#allocation5 + $0xa8] sm:$0xff] }
  0x5a   :  { %762 = vmatpush.msra.mxu1 %v3417_v8  ;;  %882 = vmatpush.msra.mxu3 %v3431_v32  ;;  %v5537_v8 = vand.u32 4294901760, %v3510_v40  ;;  %v3781_v40 = vand.u32 4294901760, %v3769_v12 }
  0x5b   :  { %585 = vmatmul.f32.vlgmr.msrb.gmra.mxu2 %v3745_v28  ;;  %719 = vmatpush.msra.mxu0 %v3525_v27  ;;  %v5542_v27 = vand.u32 4294901760, %v3551_v31 }
  0x5c   :  { %764 = vmatpush.msra.mxu1 %v3431_v32  ;;  %821 = vmatpush.msra.mxu2 %v5536_v54  ;;  %5540 = vst [vmem:[#allocation22_spill] sm:$0xff] %v3781_v40  ;;  %v5541_v32 = vand.u32 4294901760, %v3538_v50 }
  0x5d   :  { %884 = vmatpush.msra.mxu3 %v3448_v44  ;;  %499 = vmatmul.f32.vlgmr.msrb.gmra.mxu0 %v3577_v38 }
  0x5e   :  { %694 = vmatmul.f32.vlgmr.msrb.gmra.mxu3 %v3689_v30  ;;  %722 = vmatpush.msra.mxu0 %v3538_v50  ;;  %v5544_v50 = vand.u32 4294901760, %v3575_v7 }
  0x5f   :  { %766 = vmatpush.msra.mxu1 %v3448_v44  ;;  %825 = vmatpush.msra.mxu2 %v5537_v8  ;;  %v5543_v44 = vand.u32 4294901760, %v3563_v60 }
  0x60   :  { %886 = vmatpush.msra.mxu3 %v3463_v55  ;;  %540 = vmatmul.f32.vlgmr.msrb.gmra.mxu1 %v3577_v38 }
  0x61   :  { %725 = vmatpush.msra.mxu0 %v3551_v31  ;;  %768 = vmatpush.msra.mxu1 %v3463_v55  ;;  %v105_v55 = vld [vmem:[#allocation5 + $0x1c8] sm:$0xff] }
  0x62   :  { %829 = vmatpush.msra.mxu2 %v5539_v0  ;;  %888 = vmatpush.msra.mxu3 %v3484_v18 }
  0x63   :  { %728 = vmatpush.msra.mxu0 %v3563_v60  ;;  %770 = vmatpush.msra.mxu1 %v3484_v18  ;;  %v591_v18 = vsub.f32 %v3769_v12, %v3781_v40 }
  0x64   :  { %833 = vmatpush.msra.mxu2 %v5541_v32  ;;  %890 = vmatpush.msra.mxu3 %v3497_v47  ;;  %v65_v32 = vld [vmem:[#allocation5 + $0x88] sm:$0xff] }
  0x65   :  { %731 = vmatpush.msra.mxu0 %v3575_v7  ;;  %772 = vmatpush.msra.mxu1 %v3497_v47  ;;  %v109_v47 = vld [vmem:[#allocation5 + $0x1e8] sm:$0xff] }
  0x66   :  { %837 = vmatpush.msra.mxu2 %v5542_v27  ;;  %892 = vmatpush.msra.mxu3 %v3512_v33  ;;  %v3810_v31 = vand.u32 4294901760, %v109_v47  ;;  %v97_v7 = vld [vmem:[#allocation5 + $0x188] sm:$0xff]  ;;  %v3921_v27 = vand.u32 4294901760, %v69_v13 }
  0x67   :  { %734 = vmatpush.msra.mxu0 %v3588_v49  ;;  %774 = vmatpush.msra.mxu1 %v3512_v33  ;;  %v3805_v33 = vand.u32 4294901760, %v591_v18  ;;  %v93_v49 = vld [vmem:[#allocation5 + $0x168] sm:$0xff] }
  0x68   :  { %841 = vmatpush.msra.mxu2 %v5543_v44  ;;  %894 = vmatpush.msra.mxu3 %v3527_v24 }
  0x69   :  { %737 = vmatpush.msra.mxu0 %v3617_v29  ;;  %776 = vmatpush.msra.mxu1 %v3527_v24  ;;  %5545 = vst [vmem:[#allocation23_spill] sm:$0xff] %v3805_v33  ;;  %v101_v24 = vld [vmem:[#allocation5 + $0x1a8] sm:$0xff]  ;;  %v3843_v29 = vand.u32 4294901760, %v93_v49 }
  0x6a   :  { %845 = vmatpush.msra.mxu2 %v5544_v50  ;;  %896 = vmatpush.msra.mxu3 %v3540_v23  ;;  %v3823_v60 = vand.u32 4294901760, %v101_v24  ;;  %v3930_v50 = vsub.f32 %v73_v45, %v3904_v16 }
  0x6b   :  { %503 = vmatmul.f32.gmra.mxu0 %v3640_v19  ;;  %778 = vmatpush.msra.mxu1 %v3540_v23  ;;  %v3817_v23 = vand.u32 4294901760, %v105_v55 }
  0x6c   :  { %740 = vmatpush.msra.mxu0 %v3632_v42  ;;  %849 = vmatpush.msra.mxu2 %v659_v15 }
  0x6d   :  { %898 = vmatpush.msra.mxu3 %v3553_v37  ;;  %780 = vmatpush.msra.mxu1 %v3553_v37  ;;  %v3826_v37 = vsub.f32 %v109_v47, %v3810_v31  ;;  %v3834_v15 = vsub.f32 %v105_v55, %v3817_v23  ;;  %v61_v55 = vld [vmem:[#allocation5 + $0x68] sm:$0xff] }
  0x6e   :  { %743 = vmatpush.msra.mxu0 %v3647_v36  ;;  %853 = vmatpush.msra.mxu2 %v665_v10  ;;  %v3847_v10 = vsub.f32 %v101_v24, %v3823_v60  ;;  %v85_v36 = vld [vmem:[#allocation5 + $0x128] sm:$0xff] }
  0x6f   :  { %900 = vmatpush.msra.mxu3 %v3565_v57  ;;  %593 = vmatmul.f32.gmra.mxu2 %v3805_v33  ;;  %v5429_v42 = vand.u32 4294901760, %v3826_v37 }
  0x70   :  { %746 = vmatpush.msra.mxu0 %v3663_v41  ;;  %782 = vmatpush.msra.mxu1 %v3565_v57  ;;  %v3839_v57 = vand.u32 4294901760, %v97_v7  ;;  %v5427_v41 = vand.u32 4294901760, %v3847_v10 }
  0x71   :  { %857 = vmatpush.msra.mxu2 %v671_v52  ;;  %902 = vmatpush.msra.mxu3 %v3593_v3  ;;  %v89_v52 = vld [vmem:[#allocation5 + $0x148] sm:$0xff] }
  0x72   :  { %698 = vmatmul.f32.gmra.mxu3 %v3756_v43  ;;  %749 = vmatpush.msra.mxu0 %v3682_v1  ;;  %v3860_v22 = vsub.f32 %v97_v7, %v3839_v57  ;;  %v984_v51 = vsub.f32 %v3847_v10, %v5427_v41 }
  0x73   :  { %784 = vmatpush.msra.mxu1 %v3593_v3  ;;  %861 = vmatpush.msra.mxu2 %v677_v58  ;;  %v5428_v3 = vand.u32 4294901760, %v3834_v15  ;;  %v3857_v58 = vand.u32 4294901760, %v89_v52 }
  0x74   :  { %904 = vmatpush.msra.mxu3 %v3606_v4  ;;  %544 = vmatmul.f32.gmra.mxu1 %v3640_v19  ;;  %v5425_v53 = vand.u32 4294901760, %v3860_v22  ;;  %v145_v19 = vld [vmem:[#allocation5 + $0x308] sm:$0xff] }
  0x75   :  { %752 = vmatmul.f32.vlgmr.msra.gmra.mxu0 %v3711_v17  ;;  %786 = vmatpush.msra.mxu1 %v3606_v4  ;;  %v972_v4 = vsub.f32 %v3826_v37, %v5429_v42  ;;  %v978_v1 = vsub.f32 %v3834_v15, %v5428_v3  ;;  %v3887_v2 = vsub.f32 %v89_v52, %v3857_v58  ;;  %v153_v17 = vld [vmem:[#allocation5 + $0x348] sm:$0xff]  ;;  %v4081_v46 = vand.u32 4294901760, %v145_v19 }
  0x76   :  { %921 = vmatpush.msrb.mxu0 %v3810_v31  ;;  %865 = vmatpush.msra.mxu2 %v683_v20  ;;  %v3870_v20 = vsub.f32 %v93_v49, %v3843_v29  ;;  %v990_v54 = vsub.f32 %v3860_v22, %v5425_v53  ;;  %v3937_v49 = vand.u32 4294901760, %v65_v32  ;;  %v4053_v33 = vand.u32 4294901760, %v153_v17 }
  0x77   :  { %906 = vmatpush.msra.mxu3 %v3619_v5  ;;  %788 = vmatpush.msra.mxu1 %v3619_v5  ;;  %v3874_v5 = vand.u32 4294901760, %v85_v36  ;;  %v973_v9 = vand.u32 4294901760, %v972_v4  ;;  %v979_v63 = vand.u32 4294901760, %v978_v1  ;;  %v5422_v8 = vand.u32 4294901760, %v3887_v2 }
  0x78   :  { %923 = vmatpush.msrb.mxu0 %v3817_v23  ;;  %869 = vmatpush.msra.mxu2 %v689_v39  ;;  %v3881_v39 = vand.u32 4294901760, %v81_v34  ;;  %v5424_v56 = vand.u32 4294901760, %v3870_v20  ;;  %v991_v24 = vand.u32 4294901760, %v990_v54  ;;  %v3945_v4 = vand.u32 4294901760, %v61_v55 }
  0x79   :  { %908 = vmatpush.msra.mxu3 %v3638_v14  ;;  %871 = vmatmul.f32.vlgmr.msra.gmra.mxu2 %v3689_v30  ;;  %v3900_v6 = vsub.f32 %v85_v36, %v3874_v5  ;;  %v1002_v7 = vsub.f32 %v3887_v2, %v5422_v8  ;;  %v57_v36 = vld [vmem:[#allocation5 + $0x48] sm:$0xff]  ;;  %v3961_v54 = vsub.f32 %v65_v32, %v3937_v49 }
  0x7a   :  { %925 = vmatpush.msrb.mxu0 %v3823_v60  ;;  %1076 = vmatpush.msrb.mxu2 %v3826_v37  ;;  %v3907_v48 = vsub.f32 %v81_v34, %v3881_v39  ;;  %v996_v0 = vsub.f32 %v3870_v20, %v5424_v56  ;;  %v3971_v32 = vsub.f32 %v61_v55, %v3945_v4 }
  0x7b   :  { %790 = vmatpush.msra.mxu1 %v3638_v14  ;;  %910 = vmatpush.msra.mxu3 %v3656_v11  ;;  %v3897_v14 = vand.u32 4294901760, %v77_v62  ;;  %v5421_v18 = vand.u32 4294901760, %v3900_v6  ;;  %v5433_v55 = vand.u32 4294901760, %v3961_v54 }
  0x7c   :  { %912 = vmatmul.f32.vlgmr.msra.gmra.mxu3 %v3689_v30  ;;  %927 = vmatpush.msrb.mxu0 %v3839_v57  ;;  %v5420_v47 = vand.u32 4294901760, %v3907_v48  ;;  %v997_v52 = vand.u32 4294901760, %v996_v0  ;;  %v173_v0 = vld [vmem:[#allocation5 + $0x3e8] sm:$0xff] }
  0x7d   :  { %1079 = vmatpush.msrb.mxu2 %v3834_v15  ;;  %1134 = vmatpush.msrb.mxu3 %v3810_v31  ;;  %v3925_v44 = vsub.f32 %v77_v62, %v3897_v14  ;;  %v1008_v34 = vsub.f32 %v3900_v6, %v5421_v18  ;;  %v3949_v62 = vsub.f32 %v69_v13, %v3921_v27  ;;  %v53_v13 = vld [vmem:[#allocation5 + $0x28] sm:$0xff]  ;;  %v3987_v53 = vand.u32 4294901760, %v173_v0 }
  0x7e   :  { %792 = vmatpush.msra.mxu1 %v3656_v11  ;;  %929 = vmatpush.msrb.mxu0 %v3843_v29  ;;  %v985_v11 = vand.u32 4294901760, %v984_v51  ;;  %v1014_v45 = vsub.f32 %v3907_v48, %v5420_v47  ;;  %v1003_v51 = vand.u32 4294901760, %v1002_v7 }
  0x7f   :  { %796 = vmatmul.f32.vlgmr.msra.gmra.mxu1 %v3726_v26  ;;  %1082 = vmatpush.msrb.mxu2 %v3847_v10  ;;  %v5423_v1 = vand.u32 4294901760, %v3925_v44  ;;  %v1009_v47 = vand.u32 4294901760, %v1008_v34  ;;  %v5430_v7 = vand.u32 4294901760, %v3949_v62  ;;  %v169_v34 = vld [vmem:[#allocation5 + $0x3c8] sm:$0xff] }
  0x80   :  { %974 = vmatpush.msrb.mxu1 %v973_v9  ;;  %1136 = vmatpush.msrb.mxu3 %v3817_v23  ;;  %v5426_v9 = vand.u32 4294901760, %v3930_v50  ;;  %v1015_v18 = vand.u32 4294901760, %v1014_v45  ;;  %v3996_v41 = vand.u32 4294901760, %v169_v34 }
  0x81   :  { %931 = vmatpush.msrb.mxu0 %v3857_v58  ;;  %1085 = vmatpush.msrb.mxu2 %v3860_v22 }
  0x82   :  { %980 = vmatpush.msrb.mxu1 %v979_v63  ;;  %1138 = vmatpush.msrb.mxu3 %v3823_v60  ;;  %v3958_v63 = vand.u32 4294901760, %v57_v36  ;;  %v1026_v8 = vsub.f32 %v3930_v50, %v5426_v9  ;;  %v4012_v9 = vsub.f32 %v173_v0, %v3987_v53  ;;  %v157_v0 = vld [vmem:[#allocation5 + $0x368] sm:$0xff] }
  0x83   :  { %757 = vmatmul.f32.gmra.mxu0 %v3769_v12  ;;  %875 = vmatmul.f32.gmra.mxu2 %v3756_v43 }
  0x84   :  { %933 = vmatpush.msrb.mxu0 %v3874_v5  ;;  %986 = vmatpush.msrb.mxu1 %v985_v11  ;;  %5546 = vst [vmem:[#allocation24_spill] sm:$0xff] %v3958_v63  ;;  %v49_v11 = vld [vmem:[#allocation5 + $0x8] sm:$0xff]  ;;  %v3985_v56 = vsub.f32 %v57_v36, %v3958_v63  ;;  %v1027_v3 = vand.u32 4294901760, %v1026_v8 }
  0x85   :  { %1088 = vmatpush.msrb.mxu2 %v3870_v20  ;;  %1140 = vmatpush.msrb.mxu3 %v3839_v57  ;;  %v165_v36 = vld [vmem:[#allocation5 + $0x3a8] sm:$0xff] }
  0x86   :  { %916 = vmatmul.f32.gmra.mxu3 %v3756_v43  ;;  %935 = vmatpush.msrb.mxu0 %v3881_v39  ;;  %v4016_v8 = vand.u32 4294901760, %v165_v36  ;;  %v4041_v43 = vand.u32 4294901760, %v157_v0 }
  0x87   :  { %992 = vmatpush.msrb.mxu1 %v991_v24  ;;  %1091 = vmatpush.msrb.mxu2 %v3887_v2  ;;  %v1020_v24 = vsub.f32 %v3925_v44, %v5423_v1  ;;  %v3981_v1 = vand.u32 4294901760, %v49_v11 }
  0x88   :  { %1142 = vmatpush.msrb.mxu3 %v3843_v29  ;;  %802 = vmatmul.f32.gmra.mxu1 %v3781_v40  ;;  %v161_v40 = vld [vmem:[#allocation5 + $0x388] sm:$0xff] }
  0x89   :  { %937 = vmatpush.msrb.mxu0 %v3897_v14  ;;  %998 = vmatpush.msrb.mxu1 %v997_v52  ;;  %v3978_v52 = vand.u32 4294901760, %v53_v13  ;;  %v1021_v45 = vand.u32 4294901760, %v1020_v24  ;;  %v4028_v12 = vand.u32 4294901760, %v161_v40  ;;  %v4039_v24 = vsub.f32 %v165_v36, %v4016_v8 }
  0x8a   :  { %1094 = vmatpush.msrb.mxu2 %v3900_v6  ;;  %1144 = vmatpush.msrb.mxu3 %v3857_v58 }
  0x8b   :  { %939 = vmatpush.msrb.mxu0 %v3904_v16  ;;  %1004 = vmatpush.msrb.mxu1 %v1003_v51  ;;  %v1032_v51 = vsub.f32 %v3949_v62, %v5430_v7  ;;  %v4001_v42 = vsub.f32 %v53_v13, %v3978_v52  ;;  %v4009_v7 = vsub.f32 %v49_v11, %v3981_v1  ;;  %v5547_v13 = vand.u32 4294901760, %v3971_v32 }
  0x8c   :  { %1097 = vmatpush.msrb.mxu2 %v3907_v48  ;;  %1146 = vmatpush.msrb.mxu3 %v3874_v5  ;;  %v4023_v11 = vsub.f32 %v169_v34, %v3996_v41  ;;  %v4051_v36 = vsub.f32 %v161_v40, %v4028_v12  ;;  %v4066_v40 = vsub.f32 %v157_v0, %v4041_v43 }
  0x8d   :  { %941 = vmatpush.msrb.mxu0 %v3921_v27  ;;  %1010 = vmatpush.msrb.mxu1 %v1009_v47  ;;  %v1038_v47 = vsub.f32 %v3961_v54, %v5433_v55  ;;  %v1044_v55 = vsub.f32 %v3971_v32, %v5547_v13  ;;  %v5550_v26 = vand.u32 4294901760, %v4001_v42  ;;  %v5552_v30 = vand.u32 4294901760, %v4009_v7 }
  0x8e   :  { %1100 = vmatpush.msrb.mxu2 %v3925_v44  ;;  %1148 = vmatpush.msrb.mxu3 %v3881_v39  ;;  %5548 = vst [vmem:[#allocation25_spill] sm:$0xff] %v4023_v11  ;;  %v4079_v0 = vsub.f32 %v153_v17, %v4053_v33  ;;  %v133_v17 = vld [vmem:[#allocation5 + $0x2a8] sm:$0xff] }
  0x8f   :  { %943 = vmatpush.msrb.mxu0 %v3937_v49  ;;  %1016 = vmatpush.msrb.mxu1 %v1015_v18  ;;  %v1033_v18 = vand.u32 4294901760, %v1032_v51  ;;  %v5549_v51 = vand.u32 4294901760, %v3985_v56  ;;  %v1056_v34 = vsub.f32 %v4001_v42, %v5550_v26  ;;  %v1062_v28 = vsub.f32 %v4009_v7, %v5552_v30 }
  0x90   :  { %1103 = vmatpush.msrb.mxu2 %v3930_v50  ;;  %1150 = vmatpush.msrb.mxu3 %v3897_v14 }
  0x91   :  { %945 = vmatpush.msrb.mxu0 %v3945_v4  ;;  %1022 = vmatpush.msrb.mxu1 %v1021_v45  ;;  %v1039_v45 = vand.u32 4294901760, %v1038_v47  ;;  %v1050_v13 = vsub.f32 %v3985_v56, %v5549_v51  ;;  %v149_v51 = vld [vmem:[#allocation5 + $0x328] sm:$0xff]  ;;  %v1057_v21 = vand.u32 4294901760, %v1056_v34  ;;  %v5556_v34 = vand.u32 4294901760, %v4039_v24 }
  0x92   :  { %1106 = vmatpush.msrb.mxu2 %v3949_v62  ;;  %1152 = vmatpush.msrb.mxu3 %v3904_v16 }
  0x93   :  { %947 = vmatpush.msrb.mxu0 %v3958_v63  ;;  %1028 = vmatpush.msrb.mxu1 %v1027_v3  ;;  %v1045_v3 = vand.u32 4294901760, %v1044_v55  ;;  %v1051_v55 = vand.u32 4294901760, %v1050_v13  ;;  %v5553_v13 = vand.u32 4294901760, %v3826_v37  ;;  %v5555_v37 = vand.u32 4294901760, %v3834_v15 }
  0x94   :  { %1109 = vmatpush.msrb.mxu2 %v3961_v54  ;;  %1154 = vmatpush.msrb.mxu3 %v3921_v27  ;;  %v1356_v26 = vsub.f32 %v4039_v24, %v5556_v34  ;;  %v5557_v15 = vand.u32 4294901760, %v3847_v10  ;;  %v5559_v10 = vand.u32 4294901760, %v3860_v22  ;;  %v4122_v22 = vand.u32 4294901760, %v133_v17 }
  0x95   :  { %949 = vmatpush.msrb.mxu0 %v3978_v52  ;;  %1034 = vmatpush.msrb.mxu1 %v1033_v18  ;;  %v5551_v18 = vand.u32 4294901760, %v4012_v9 }
  0x96   :  { %1112 = vmatpush.msrb.mxu2 %v3971_v32  ;;  %1156 = vmatpush.msrb.mxu3 %v3937_v49 }
  0x97   :  { %951 = vmatpush.msrb.mxu0 %v3981_v1  ;;  %1040 = vmatpush.msrb.mxu1 %v1039_v45  ;;  %v1344_v47 = vsub.f32 %v4012_v9, %v5551_v18  ;;  %v4068_v45 = vand.u32 4294901760, %v149_v51  ;;  %v5554_v18 = vand.u32 4294901760, %v4023_v11 }
  0x98   :  { %1115 = vmatpush.msrb.mxu2 %v3985_v56  ;;  %1158 = vmatpush.msrb.mxu3 %v3945_v4 }
  0x99   :  { %1181 = vmatpush.msra.mxu0 %v5553_v13  ;;  %1046 = vmatpush.msrb.mxu1 %v1045_v3  ;;  %v1350_v30 = vsub.f32 %v4023_v11, %v5554_v18  ;;  %v1345_v3 = vand.u32 4294901760, %v1344_v47  ;;  %v1063_v13 = vand.u32 4294901760, %v1062_v28  ;;  %v137_v18 = vld [vmem:[#allocation5 + $0x2c8] sm:$0xff]  ;;  %v4094_v11 = vand.u32 4294901760, %v141_v59 }
  0x9a   :  { %1118 = vmatpush.msrb.mxu2 %v4001_v42  ;;  %1160 = vmatpush.msrb.mxu3 %v3958_v63  ;;  %v4092_v63 = vsub.f32 %v149_v51, %v4068_v45  ;;  %v5558_v47 = vand.u32 4294901760, %v4051_v36  ;;  %v4105_v51 = vsub.f32 %v145_v19, %v4081_v46  ;;  %v4107_v34 = vand.u32 4294901760, %v137_v18 }
  0x9b   :  { %1185 = vmatpush.msra.mxu0 %v5555_v37  ;;  %1052 = vmatpush.msrb.mxu1 %v1051_v55  ;;  %v1351_v28 = vand.u32 4294901760, %v1350_v30  ;;  %v5560_v30 = vand.u32 4294901760, %v4066_v40  ;;  %v4117_v19 = vsub.f32 %v141_v59, %v4094_v11  ;;  %v5561_v37 = vand.u32 4294901760, %v3870_v20 }
  0x9c   :  { %1121 = vmatpush.msrb.mxu2 %v4009_v7  ;;  %1162 = vmatpush.msrb.mxu3 %v3978_v52  ;;  %v1362_v55 = vsub.f32 %v4051_v36, %v5558_v47  ;;  %v5459_v47 = vand.u32 4294901760, %v4092_v63  ;;  %v4130_v59 = vsub.f32 %v137_v18, %v4107_v34  ;;  %v5563_v20 = vand.u32 4294901760, %v3887_v2  ;;  %v121_v2 = vld [vmem:[#allocation5 + $0x248] sm:$0xff] }
  0x9d   :  { %1189 = vmatpush.msra.mxu0 %v5557_v15  ;;  %1058 = vmatpush.msrb.mxu1 %v1057_v21  ;;  %v1357_v21 = vand.u32 4294901760, %v1356_v26  ;;  %v1368_v15 = vsub.f32 %v4066_v40, %v5560_v30  ;;  %v5460_v30 = vand.u32 4294901760, %v4105_v51  ;;  %v5564_v18 = vand.u32 4294901760, %v3900_v6 }
  0x9e   :  { %1293 = vmatpush.msra.mxu2 %v3987_v53  ;;  %1164 = vmatpush.msrb.mxu3 %v3981_v1  ;;  %v1363_v26 = vand.u32 4294901760, %v1362_v55  ;;  %v1380_v55 = vsub.f32 %v4092_v63, %v5459_v47  ;;  %v5565_v6 = vand.u32 4294901760, %v3907_v48 }
  0x9f   :  { %1193 = vmatpush.msra.mxu0 %v5559_v10  ;;  %1064 = vmatpush.msrb.mxu1 %v1063_v13  ;;  %v129_v10 = vld [vmem:[#allocation5 + $0x288] sm:$0xff] }
  0xa0   :  { %1295 = vmatpush.msra.mxu2 %v3996_v41  ;;  %1346 = vmatpush.msra.mxu3 %v1345_v3  ;;  %v5562_v3 = vand.u32 4294901760, %v4079_v0 }
  0xa1   :  { %1197 = vmatpush.msra.mxu0 %v5561_v37  ;;  %1252 = vmatpush.msra.mxu1 %v3810_v31  ;;  %v125_v31 = vld [vmem:[#allocation5 + $0x268] sm:$0xff]  ;;  %v1391_v37 = vand.u32 4294901760, %v4117_v19 }
  0xa2   :  { %1297 = vmatpush.msra.mxu2 %v4016_v8  ;;  %1352 = vmatpush.msra.mxu3 %v1351_v28  ;;  %v1374_v13 = vsub.f32 %v4079_v0, %v5562_v3  ;;  %v1369_v28 = vand.u32 4294901760, %v1368_v15  ;;  %v4140_v3 = vand.u32 4294901760, %v129_v10  ;;  %v1386_v15 = vsub.f32 %v4105_v51, %v5460_v30 }
  0xa3   :  { %1201 = vmatpush.msra.mxu0 %v5563_v20  ;;  %1254 = vmatpush.msra.mxu1 %v3817_v23  ;;  %v4146_v23 = vsub.f32 %v133_v17, %v4122_v22  ;;  %v1397_v20 = vand.u32 4294901760, %v4130_v59  ;;  %v4153_v47 = vand.u32 4294901760, %v125_v31  ;;  %v1392_v17 = vsub.f32 %v4117_v19, %v1391_v37 }
  0xa4   :  { %1299 = vmatpush.msra.mxu2 %v4028_v12  ;;  %1358 = vmatpush.msra.mxu3 %v1357_v21  ;;  %v1375_v21 = vand.u32 4294901760, %v1374_v13  ;;  %v4165_v13 = vand.u32 4294901760, %v121_v2  ;;  %v5566_v30 = vand.u32 4294901760, %v3925_v44  ;;  %v1387_v48 = vand.u32 4294901760, %v1386_v15 }
  0xa5   :  { %1205 = vmatpush.msra.mxu0 %v5564_v18  ;;  %1256 = vmatpush.msra.mxu1 %v3823_v60  ;;  %v1381_v60 = vand.u32 4294901760, %v1380_v55  ;;  %v117_v18 = vld [vmem:[#allocation5 + $0x228] sm:$0xff]  ;;  %v5567_v55 = vand.u32 4294901760, %v3930_v50 }
  0xa6   :  { %1301 = vmatpush.msra.mxu2 %v4041_v43  ;;  %1364 = vmatpush.msra.mxu3 %v1363_v26  ;;  %v4163_v26 = vsub.f32 %v129_v10, %v4140_v3  ;;  %v4176_v10 = vsub.f32 %v125_v31, %v4153_v47  ;;  %v4181_v44 = vand.u32 4294901760, %v117_v18  ;;  %v4186_v15 = vsub.f32 %v121_v2, %v4165_v13 }
  0xa7   :  { %1209 = vmatpush.msra.mxu0 %v5565_v6  ;;  %1258 = vmatpush.msra.mxu1 %v3839_v57  ;;  %v1403_v57 = vand.u32 4294901760, %v4146_v23  ;;  %v5568_v31 = vand.u32 4294901760, %v3949_v62  ;;  %v5569_v2 = vand.u32 4294901760, %v3961_v54 }
  0xa8   :  { %1303 = vmatpush.msra.mxu2 %v4053_v33  ;;  %1370 = vmatpush.msra.mxu3 %v1369_v28  ;;  %v1398_v28 = vsub.f32 %v4130_v59, %v1397_v20  ;;  %v1415_v6 = vand.u32 4294901760, %v4176_v10  ;;  %v4202_v62 = vsub.f32 %v117_v18, %v4181_v44 }
  0xa9   :  { %1213 = vmatpush.msra.mxu0 %v5566_v30  ;;  %1260 = vmatpush.msra.mxu1 %v3843_v29  ;;  %v113_v29 = vld [vmem:[#allocation5 + $0x208] sm:$0xff]  ;;  %v1393_v30 = vand.u32 4294901760, %v1392_v17  ;;  %v1421_v17 = vand.u32 4294901760, %v4186_v15 }
  0xaa   :  { %1305 = vmatpush.msra.mxu2 %v4068_v45  ;;  %1376 = vmatpush.msra.mxu3 %v1375_v21  ;;  %v1409_v21 = vand.u32 4294901760, %v4163_v26  ;;  %v1399_v50 = vand.u32 4294901760, %v1398_v28  ;;  %v5571_v28 = vand.u32 4294901760, %v3985_v56 }
  0xab   :  { %1217 = vmatpush.msra.mxu0 %v5567_v55  ;;  %1262 = vmatpush.msra.mxu1 %v3857_v58  ;;  %v1404_v58 = vsub.f32 %v4146_v23, %v1403_v57  ;;  %v1422_v55 = vsub.f32 %v4186_v15, %v1421_v17 }
  0xac   :  { %1307 = vmatpush.msra.mxu2 %v4081_v46  ;;  %1382 = vmatpush.msra.mxu3 %v1381_v60  ;;  %v4196_v60 = vand.u32 4294901760, %v113_v29 }
  0xad   :  { %1221 = vmatpush.msra.mxu0 %v5568_v31  ;;  %1264 = vmatpush.msra.mxu1 %v3874_v5  ;;  %v1410_v5 = vsub.f32 %v4163_v26, %v1409_v21  ;;  %v1405_v54 = vand.u32 4294901760, %v1404_v58  ;;  %v1423_v31 = vand.u32 4294901760, %v1422_v55  ;;  %v5573_v58 = vand.u32 4294901760, %v4009_v7  ;;  %v5575_v7 = vld [vmem:[#allocation25_spill] sm:$0xff] }
  0xae   :  { %1309 = vmatpush.msra.mxu2 %v4094_v11  ;;  %1388 = vmatpush.msra.mxu3 %v1387_v48  ;;  %v5570_v48 = vand.u32 4294901760, %v3971_v32  ;;  %v4217_v18 = vsub.f32 %v113_v29, %v4196_v60  ;;  %v1427_v32 = vand.u32 4294901760, %v4202_v62  ;;  %v5572_v29 = vand.u32 4294901760, %v4001_v42  ;;  %v5592_v55 = vld [vmem:[#allocation17_spill] sm:$0xff] }
  0xaf   :  { %1225 = vmatpush.msra.mxu0 %v5569_v2  ;;  %1266 = vmatpush.msra.mxu1 %v3881_v39  ;;  %v1416_v39 = vsub.f32 %v4176_v10, %v1415_v6 }
  0xb0   :  { %1311 = vmatpush.msra.mxu2 %v4107_v34  ;;  %1394 = vmatpush.msra.mxu3 %v1393_v30  ;;  %v1433_v30 = vand.u32 4294901760, %v4217_v18 }
  0xb1   :  { %1229 = vmatpush.msra.mxu0 %v5570_v48  ;;  %1268 = vmatpush.msra.mxu1 %v3897_v14  ;;  %v1411_v14 = vand.u32 4294901760, %v1410_v5  ;;  %v1417_v56 = vand.u32 4294901760, %v1416_v39  ;;  %v5577_v5 = vld [vmem:[#allocation18_spill] sm:$0xff]  ;;  %v5578_v48 = vld [vmem:[#allocation15_spill] sm:$0xff]  ;;  %v5581_v39 = vand.u32 4294901760, %v5575_v7 }
  0xb2   :  { %1313 = vmatpush.msra.mxu2 %v4122_v22  ;;  %1400 = vmatpush.msra.mxu3 %v1399_v50  ;;  %v1434_v42 = vsub.f32 %v4217_v18, %v1433_v30  ;;  %v5574_v50 = vld [vmem:[#allocation14_spill] sm:$0xff] }
  0xb3   :  { %1124 = vmatmul.f32.vlgmr.msrb.gmra.mxu2 %v3601_v61  ;;  %1233 = vmatpush.msra.mxu0 %v5571_v28  ;;  %v5584_v28 = vand.u32 4294901760, %v4051_v36 }
  0xb4   :  { %1270 = vmatpush.msra.mxu1 %v3904_v16  ;;  %1315 = vmatpush.msra.mxu2 %v4140_v3  ;;  %v1428_v16 = vsub.f32 %v4202_v62, %v1427_v32  ;;  %v1435_v2 = vand.u32 4294901760, %v1434_v42  ;;  %v78_v42 = vld [vmem:[#allocation5 + $0xf0] sm:$0xff] }
  0xb5   :  { %1406 = vmatpush.msra.mxu3 %v1405_v54  ;;  %957 = vmatmul.f32.vlgmr.msrb.gmra.mxu0 %v3673_v25  ;;  %v5580_v54 = vld [vmem:[#allocation13_spill] sm:$0xff] }
  0xb6   :  { %1168 = vmatmul.f32.vlgmr.msrb.gmra.mxu3 %v3626_v35  ;;  %1237 = vmatpush.msra.mxu0 %v5572_v29 }
  0xb7   :  { %1272 = vmatpush.msra.mxu1 %v3921_v27  ;;  %1317 = vmatpush.msra.mxu2 %v4153_v47  ;;  %v1429_v27 = vand.u32 4294901760, %v1428_v16 }
  0xb8   :  { %1412 = vmatpush.msra.mxu3 %v1411_v14  ;;  %1066 = vmatmul.f32.vlgmr.msrb.gmra.mxu1 %v3577_v38  ;;  %v90_v14 = vld [vmem:[#allocation5 + $0x150] sm:$0xff] }
  0xb9   :  { %1241 = vmatpush.msra.mxu0 %v5573_v58  ;;  %1274 = vmatpush.msra.mxu1 %v3937_v49  ;;  %v5576_v49 = vld [vmem:[#allocation24_spill] sm:$0xff]  ;;  %v4363_v29 = vand.u32 4294901760, %v90_v14 }
  0xba   :  { %1319 = vmatpush.msra.mxu2 %v4165_v13  ;;  %1418 = vmatpush.msra.mxu3 %v1417_v56 }
  0xbb   :  { %1448 = vmatpush.msrb.mxu0 %v4012_v9  ;;  %1276 = vmatpush.msra.mxu1 %v3945_v4  ;;  %v5579_v4 = vand.u32 4294901760, %v4012_v9  ;;  %v5582_v9 = vand.u32 4294901760, %v4039_v24 }
  0xbc   :  { %1321 = vmatpush.msra.mxu2 %v4181_v44  ;;  %1424 = vmatpush.msra.mxu3 %v1423_v31 }
  0xbd   :  { %1129 = vmatmul.f32.gmra.mxu2 %v5574_v50  ;;  %1451 = vmatpush.msrb.mxu0 %v5575_v7  ;;  %v146_v50 = vld [vmem:[#allocation5 + $0x310] sm:$0xff] }
  0xbe   :  { %1278 = vmatpush.msra.mxu1 %v5576_v49  ;;  %1323 = vmatpush.msra.mxu2 %v4196_v60  ;;  %v4395_v49 = vsub.f32 %v90_v14, %v4363_v29 }
  0xbf   :  { %1430 = vmatpush.msra.mxu3 %v1429_v27  ;;  %965 = vmatmul.f32.gmra.mxu0 %v5577_v5  ;;  %v154_v5 = vld [vmem:[#allocation5 + $0x350] sm:$0xff] }
  0xc0   :  { %1174 = vmatmul.f32.gmra.mxu3 %v5578_v48  ;;  %1454 = vmatpush.msrb.mxu0 %v4039_v24  ;;  %v5588_v24 = vand.u32 4294901760, %v4092_v63 }
  0xc1   :  { %1553 = vmatpush.msrb.mxu2 %v5579_v4  ;;  %1280 = vmatpush.msra.mxu1 %v3978_v52  ;;  %v5583_v52 = vld [vmem:[#allocation20_spill] sm:$0xff] }
  0xc2   :  { %1436 = vmatpush.msra.mxu3 %v1435_v2  ;;  %1070 = vmatmul.f32.gmra.mxu1 %v5580_v54  ;;  %v74_v2 = vld [vmem:[#allocation5 + $0xd0] sm:$0xff] }
  0xc3   :  { %1457 = vmatpush.msrb.mxu0 %v4051_v36  ;;  %1557 = vmatpush.msrb.mxu2 %v5581_v39  ;;  %v106_v36 = vld [vmem:[#allocation5 + $0x1d0] sm:$0xff] }
  0xc4   :  { %1624 = vmatpush.msrb.mxu3 %v3987_v53  ;;  %1282 = vmatpush.msra.mxu1 %v3981_v1  ;;  %v5585_v1 = vld [vmem:[#allocation16_spill] sm:$0xff] }
  0xc5   :  { %1460 = vmatpush.msrb.mxu0 %v4066_v40  ;;  %1561 = vmatpush.msrb.mxu2 %v5582_v9 }
  0xc6   :  { %1506 = vmatpush.msrb.mxu1 %v3987_v53  ;;  %1626 = vmatpush.msrb.mxu3 %v3996_v41  ;;  %v5586_v53 = vand.u32 4294901760, %v4066_v40 }
  0xc7   :  { %1329 = vmatmul.f32.vlgmr.msra.gmra.mxu2 %v5583_v52  ;;  %1463 = vmatpush.msrb.mxu0 %v4079_v0 }
  0xc8   :  { %1508 = vmatpush.msrb.mxu1 %v3996_v41  ;;  %1565 = vmatpush.msrb.mxu2 %v5584_v28  ;;  %v5587_v41 = vand.u32 4294901760, %v4079_v0  ;;  %v5590_v0 = vld [vmem:[#allocation23_spill] sm:$0xff] }
  0xc9   :  { %1628 = vmatpush.msrb.mxu3 %v4016_v8  ;;  %1243 = vmatmul.f32.vlgmr.msra.gmra.mxu0 %v3577_v38 }
  0xca   :  { %1438 = vmatmul.f32.vlgmr.msra.gmra.mxu3 %v5585_v1  ;;  %1466 = vmatpush.msrb.mxu0 %v4092_v63  ;;  %v381_v63 = vpop.f32.mrf.mxu2 }
  0xcb   :  { %1510 = vmatpush.msrb.mxu1 %v4016_v8  ;;  %1569 = vmatpush.msrb.mxu2 %v5586_v53  ;;  %v214_v8 = vpop.f32.mrf.mxu0  ;;  %v4406_v53 = vand.u32 4294901760, %v78_v42 }
  0xcc   :  { %1630 = vmatpush.msrb.mxu3 %v4028_v12  ;;  %1284 = vmatmul.f32.vlgmr.msra.gmra.mxu1 %v3577_v38  ;;  %v138_v38 = vld [vmem:[#allocation5 + $0x2d0] sm:$0xff] }
  0xcd   :  { %1469 = vmatpush.msrb.mxu0 %v4105_v51  ;;  %1512 = vmatpush.msrb.mxu1 %v4028_v12  ;;  %v5589_v12 = vand.u32 4294901760, %v4105_v51 }
  0xce   :  { %1573 = vmatpush.msrb.mxu2 %v5587_v41  ;;  %1632 = vmatpush.msrb.mxu3 %v4041_v43 }
  0xcf   :  { %1472 = vmatpush.msrb.mxu0 %v4117_v19  ;;  %1514 = vmatpush.msrb.mxu1 %v4041_v43  ;;  %v110_v43 = vld [vmem:[#allocation5 + $0x1f0] sm:$0xff] }
  0xd0   :  { %1577 = vmatpush.msrb.mxu2 %v5588_v24  ;;  %1634 = vmatpush.msrb.mxu3 %v4053_v33  ;;  %v4314_v40 = vand.u32 4294901760, %v110_v43  ;;  %v70_v24 = vld [vmem:[#allocation5 + $0xb0] sm:$0xff] }
  0xd1   :  { %1475 = vmatpush.msrb.mxu0 %v4130_v59  ;;  %1516 = vmatpush.msrb.mxu1 %v4053_v33  ;;  %v323_v33 = vpop.f32.mrf.mxu1  ;;  %v98_v59 = vld [vmem:[#allocation5 + $0x190] sm:$0xff] }
  0xd2   :  { %1581 = vmatpush.msrb.mxu2 %v5589_v12  ;;  %1636 = vmatpush.msrb.mxu3 %v4068_v45 }
  0xd3   :  { %1478 = vmatpush.msrb.mxu0 %v4146_v23  ;;  %1518 = vmatpush.msrb.mxu1 %v4068_v45  ;;  %v102_v45 = vld [vmem:[#allocation5 + $0x1b0] sm:$0xff]  ;;  %v222_v19 = vpop.f32.mrf.mxu0  ;;  %v5591_v23 = vld [vmem:[#allocation11_spill] sm:$0xff] }
  0xd4   :  { %1585 = vmatpush.msrb.mxu2 %v1391_v37  ;;  %1638 = vmatpush.msrb.mxu3 %v4081_v46  ;;  %v4329_v51 = vand.u32 4294901760, %v102_v45  ;;  %v94_v37 = vld [vmem:[#allocation5 + $0x170] sm:$0xff] }
  0xd5   :  { %1481 = vmatpush.msrb.mxu0 %v4163_v26  ;;  %1520 = vmatpush.msrb.mxu1 %v4081_v46  ;;  %v4318_v46 = vpop.f32.mrf.mxu3 }
  0xd6   :  { %1589 = vmatpush.msrb.mxu2 %v1397_v20  ;;  %1640 = vmatpush.msrb.mxu3 %v4094_v11 }
  0xd7   :  { %1247 = vmatmul.f32.gmra.mxu0 %v5580_v54  ;;  %1522 = vmatpush.msrb.mxu1 %v4094_v11  ;;  %v4323_v11 = vand.u32 4294901760, %v106_v36 }
  0xd8   :  { %1484 = vmatpush.msrb.mxu0 %v4176_v10  ;;  %1593 = vmatpush.msrb.mxu2 %v1403_v57  ;;  %v4349_v57 = vand.u32 4294901760, %v94_v37 }
  0xd9   :  { %1642 = vmatpush.msrb.mxu3 %v4107_v34  ;;  %1524 = vmatpush.msrb.mxu1 %v4107_v34  ;;  %v4332_v34 = vsub.f32 %v110_v43, %v4314_v40  ;;  %v4340_v20 = vsub.f32 %v106_v36, %v4323_v11  ;;  %v327_v26 = vpop.f32.mrf.mxu1 }
  0xda   :  { %1487 = vmatpush.msrb.mxu0 %v4186_v15  ;;  %1597 = vmatpush.msrb.mxu2 %v1409_v21  ;;  %v4353_v21 = vsub.f32 %v102_v45, %v4329_v51  ;;  %v328_v4 = vadd.f32 %v327_v26, %v222_v19  ;;  %v66_v45 = vld [vmem:[#allocation5 + $0x90] sm:$0xff]  ;;  %v4430_v26 = vand.u32 4294901760, %v70_v24 }
  0xdb   :  { %1644 = vmatpush.msrb.mxu3 %v4122_v22  ;;  %1337 = vmatmul.f32.gmra.mxu2 %v5590_v0  ;;  %v5467_v10 = vand.u32 4294901760, %v4332_v34  ;;  %v5466_v15 = vand.u32 4294901760, %v4340_v20 }
  0xdc   :  { %1490 = vmatpush.msrb.mxu0 %v4202_v62  ;;  %1526 = vmatpush.msrb.mxu1 %v4122_v22  ;;  %v4345_v22 = vand.u32 4294901760, %v98_v59  ;;  %v5465_v62 = vand.u32 4294901760, %v4353_v21 }
  0xdd   :  { %1601 = vmatpush.msrb.mxu2 %v1415_v6  ;;  %1646 = vmatpush.msrb.mxu3 %v4140_v3  ;;  %v386_v6 = vpop.f32.mrf.mxu2  ;;  %v4368_v16 = vpop.f32.mrf.mxu3 }
  0xde   :  { %1442 = vmatmul.f32.gmra.mxu3 %v5591_v23  ;;  %1493 = vmatpush.msrb.mxu0 %v4217_v18  ;;  %v4366_v56 = vsub.f32 %v98_v59, %v4345_v22  ;;  %v1722_v18 = vsub.f32 %v4340_v20, %v5466_v15  ;;  %v387_v19 = vadd.f32 %v386_v6, %v328_v4  ;;  %v4441_v6 = vand.u32 4294901760, %v66_v45  ;;  %v5595_v4 = vld [vmem:[#allocation21_spill] sm:$0xff] }
  0xdf   :  { %1528 = vmatpush.msrb.mxu1 %v4140_v3  ;;  %1605 = vmatpush.msrb.mxu2 %v1421_v17  ;;  %v324_v3 = vadd.f32 %v323_v33, %v214_v8  ;;  %v86_v17 = vld [vmem:[#allocation5 + $0x130] sm:$0xff]  ;;  %v4415_v33 = vand.u32 4294901760, %v74_v2 }
  0xe0   :  { %1648 = vmatpush.msrb.mxu3 %v4153_v47  ;;  %1288 = vmatmul.f32.gmra.mxu1 %v5580_v54  ;;  %v4382_v58 = vand.u32 4294901760, %v86_v17  ;;  %v5464_v7 = vand.u32 4294901760, %v4366_v56  ;;  %v1723_v12 = vand.u32 4294901760, %v1722_v18  ;;  %5594 = vst [vmem:[#allocation25_spill] sm:$0xff] %v4441_v6  ;;  %v62_v18 = vld [vmem:[#allocation5 + $0x70] sm:$0xff] }
  0xe1   :  { %1496 = vmatmul.f32.vlgmr.msrb.gmra.mxu0 %v5592_v55  ;;  %1530 = vmatpush.msrb.mxu1 %v4153_v47  ;;  %v1716_v47 = vsub.f32 %v4332_v34, %v5467_v10  ;;  %v382_v31 = vadd.f32 %v381_v63, %v324_v3  ;;  %v541_v8 = vpop.f32.mrf.mxu1  ;;  %v5593_v63 = vld [vmem:[#allocation19_spill] sm:$0xff]  ;;  %v166_v55 = vld [vmem:[#allocation5 + $0x3b0] sm:$0xff] }
  0xe2   :  { %1665 = vmatpush.msra.mxu0 %v4314_v40  ;;  %1609 = vmatpush.msrb.mxu2 %v1427_v32  ;;  %v82_v32 = vld [vmem:[#allocation5 + $0x110] sm:$0xff]  ;;  %v4409_v41 = vsub.f32 %v86_v17, %v4382_v58  ;;  %v1734_v36 = vsub.f32 %v4366_v56, %v5464_v7 }
  0xe3   :  { %1650 = vmatpush.msrb.mxu3 %v4165_v13  ;;  %1532 = vmatpush.msrb.mxu1 %v4165_v13  ;;  %v4378_v13 = vsub.f32 %v94_v37, %v4349_v57  ;;  %v4391_v27 = vand.u32 4294901760, %v82_v32  ;;  %v1717_v39 = vand.u32 4294901760, %v1716_v47  ;;  %v426_v28 = vadd.f32 %v4318_v46, %v382_v31  ;;  %v54_v7 = vld [vmem:[#allocation5 + $0x30] sm:$0xff] }
  0xe4   :  { %1667 = vmatpush.msra.mxu0 %v4323_v11  ;;  %1613 = vmatpush.msrb.mxu2 %v1433_v30  ;;  %v500_v30 = vpop.f32.mrf.mxu0  ;;  %v5461_v46 = vand.u32 4294901760, %v4395_v49  ;;  %v5463_v17 = vand.u32 4294901760, %v4409_v41  ;;  %v4438_v47 = vsub.f32 %v78_v42, %v4406_v53  ;;  %v158_v54 = vld [vmem:[#allocation5 + $0x370] sm:$0xff] }
  0xe5   :  { %1652 = vmatpush.msrb.mxu3 %v4181_v44  ;;  %1615 = vmatmul.f32.vlgmr.msrb.gmra.mxu2 %v5585_v1  ;;  %v5462_v9 = vand.u32 4294901760, %v4378_v13  ;;  %v4413_v43 = vpop.f32.mrf.mxu2  ;;  %v501_v14 = vadd.f32 %v500_v30, %v426_v28  ;;  %v4434_v3 = vpop.f32.mrf.mxu3  ;;  %v1735_v30 = vand.u32 4294901760, %v1734_v36  ;;  %v432_v28 = vadd.f32 %v4368_v16, %v387_v19 }
  0xe6   :  { %1669 = vmatpush.msra.mxu0 %v4329_v51  ;;  %1820 = vmatpush.msra.mxu2 %v4332_v34  ;;  %v1746_v42 = vsub.f32 %v4395_v49, %v5461_v46  ;;  %v1752_v46 = vsub.f32 %v4409_v41, %v5463_v17  ;;  %v5469_v16 = vand.u32 4294901760, %v4438_v47 }
  0xe7   :  { %1534 = vmatpush.msrb.mxu1 %v4181_v44  ;;  %1654 = vmatpush.msrb.mxu3 %v4196_v60  ;;  %v1728_v44 = vsub.f32 %v4353_v21, %v5465_v62  ;;  %v1740_v37 = vsub.f32 %v4378_v13, %v5462_v9  ;;  %v542_v36 = vadd.f32 %v541_v8, %v501_v14  ;;  %v4462_v9 = vand.u32 4294901760, %v62_v18  ;;  %v5597_v62 = vld [vmem:[#allocation22_spill] sm:$0xff] }
  0xe8   :  { %1656 = vmatmul.f32.vlgmr.msrb.gmra.mxu3 %v5585_v1  ;;  %1671 = vmatpush.msra.mxu0 %v4345_v22  ;;  %v1747_v14 = vand.u32 4294901760, %v1746_v42  ;;  %v1753_v42 = vand.u32 4294901760, %v1752_v46 }
  0xe9   :  { %1823 = vmatpush.msra.mxu2 %v4340_v20  ;;  %1878 = vmatpush.msra.mxu3 %v4314_v40  ;;  %v1729_v59 = vand.u32 4294901760, %v1728_v44  ;;  %v58_v44 = vld [vmem:[#allocation5 + $0x50] sm:$0xff]  ;;  %5596 = vst [vmem:[#allocation24_spill] sm:$0xff] %v4462_v9 }
  0xea   :  { %1536 = vmatpush.msrb.mxu1 %v4196_v60  ;;  %1673 = vmatpush.msra.mxu0 %v4349_v57  ;;  %v4424_v60 = vsub.f32 %v82_v32, %v4391_v27  ;;  %v4444_v32 = vsub.f32 %v74_v2, %v4415_v33  ;;  %v1741_v2 = vand.u32 4294901760, %v1740_v37  ;;  %v4467_v19 = vand.u32 4294901760, %v58_v44 }
  0xeb   :  { %1540 = vmatmul.f32.vlgmr.msrb.gmra.mxu1 %v5593_v63  ;;  %1826 = vmatpush.msra.mxu2 %v4353_v21 }
  0xec   :  { %1718 = vmatpush.msra.mxu1 %v1717_v39  ;;  %1880 = vmatpush.msra.mxu3 %v4323_v11  ;;  %v504_v31 = vpop.f32.mrf.mxu0  ;;  %v5468_v39 = vand.u32 4294901760, %v4424_v60  ;;  %v4499_v46 = vsub.f32 %v58_v44, %v4467_v19 }
  0xed   :  { %1675 = vmatpush.msra.mxu0 %v4363_v29  ;;  %1829 = vmatpush.msra.mxu2 %v4366_v56  ;;  %v505_v15 = vadd.f32 %v504_v31, %v432_v28  ;;  %v5598_v31 = vand.u32 4294901760, %v4444_v32 }
  0xee   :  { %1724 = vmatpush.msra.mxu1 %v1723_v12  ;;  %1882 = vmatpush.msra.mxu3 %v4329_v51  ;;  %v4455_v12 = vsub.f32 %v70_v24, %v4430_v26  ;;  %v1758_v17 = vsub.f32 %v4424_v60, %v5468_v39  ;;  %v174_v24 = vld [vmem:[#allocation5 + $0x3f0] sm:$0xff]  ;;  %v1764_v39 = vsub.f32 %v4438_v47, %v5469_v16 }
  0xef   :  { %1501 = vmatmul.f32.gmra.mxu0 %v5595_v4  ;;  %1619 = vmatmul.f32.gmra.mxu2 %v5591_v23  ;;  %v4486_v4 = vsub.f32 %v62_v18, %v4462_v9  ;;  %v1770_v28 = vsub.f32 %v4444_v32, %v5598_v31  ;;  %v4504_v10 = vand.u32 4294901760, %v174_v24 }
  0xf0   :  { %1677 = vmatpush.msra.mxu0 %v4382_v58  ;;  %1730 = vmatpush.msra.mxu1 %v1729_v59  ;;  %v4471_v59 = vsub.f32 %v66_v45, %v4441_v6  ;;  %v50_v45 = vld [vmem:[#allocation5 + $0x10] sm:$0xff]  ;;  %v1759_v18 = vand.u32 4294901760, %v1758_v17  ;;  %v5599_v31 = vand.u32 4294901760, %v4455_v12  ;;  %v1765_v17 = vand.u32 4294901760, %v1764_v39 }
  0xf1   :  { %1832 = vmatpush.msra.mxu2 %v4378_v13  ;;  %1884 = vmatpush.msra.mxu3 %v4345_v22  ;;  %v545_v8 = vpop.f32.mrf.mxu1  ;;  %v4502_v16 = vand.u32 4294901760, %v50_v45  ;;  %v1771_v1 = vand.u32 4294901760, %v1770_v28  ;;  %v4532_v28 = vand.u32 4294901760, %v166_v55 }
  0xf2   :  { %1660 = vmatmul.f32.gmra.mxu3 %v5591_v23  ;;  %1679 = vmatpush.msra.mxu0 %v4391_v27  ;;  %v594_v37 = vpop.f32.mrf.mxu2 }
  0xf3   :  { %1736 = vmatpush.msra.mxu1 %v1735_v30  ;;  %1835 = vmatpush.msra.mxu2 %v4395_v49  ;;  %v587_v30 = vadd.f32 %v4413_v43, %v542_v36  ;;  %v170_v36 = vld [vmem:[#allocation5 + $0x3d0] sm:$0xff]  ;;  %v1776_v43 = vsub.f32 %v4455_v12, %v5599_v31  ;;  %v5600_v31 = vand.u32 4294901760, %v4471_v59 }
  0xf4   :  { %1886 = vmatpush.msra.mxu3 %v4349_v57  ;;  %1546 = vmatmul.f32.gmra.mxu1 %v5597_v62  ;;  %v546_v62 = vadd.f32 %v545_v8, %v505_v15  ;;  %v753_v44 = vpop.f32.mrf.mxu0  ;;  %v4514_v0 = vand.u32 4294901760, %v170_v36 }
  0xf5   :  { %1681 = vmatpush.msra.mxu0 %v4406_v53  ;;  %1742 = vmatpush.msra.mxu1 %v1741_v2  ;;  %v4488_v63 = vpop.f32.mrf.mxu3  ;;  %v4495_v2 = vand.u32 4294901760, %v54_v7  ;;  %v696_v23 = vadd.f32 %v4434_v3, %v587_v30  ;;  %v1782_v15 = vsub.f32 %v4471_v59, %v5600_v31  ;;  %v162_v30 = vld [vmem:[#allocation5 + $0x390] sm:$0xff] }
  0xf6   :  { %1838 = vmatpush.msra.mxu2 %v4409_v41  ;;  %1888 = vmatpush.msra.mxu3 %v4363_v29  ;;  %v595_v31 = vadd.f32 %v594_v37, %v546_v62  ;;  %v5604_v37 = vand.u32 4294901760, %v4499_v46 }
  0xf7   :  { %1683 = vmatpush.msra.mxu0 %v4415_v33  ;;  %1748 = vmatpush.msra.mxu1 %v1747_v14  ;;  %v4522_v8 = vsub.f32 %v54_v7, %v4495_v2  ;;  %v754_v39 = vadd.f32 %v753_v44, %v696_v23  ;;  %v4530_v14 = vsub.f32 %v174_v24, %v4504_v10  ;;  %v1777_v7 = vand.u32 4294901760, %v1776_v43 }
  0xf8   :  { %1841 = vmatpush.msra.mxu2 %v4424_v60  ;;  %1890 = vmatpush.msra.mxu3 %v4382_v58  ;;  %v5602_v23 = vand.u32 4294901760, %v4486_v4  ;;  %v4541_v24 = vsub.f32 %v170_v36, %v4514_v0  ;;  %v4543_v44 = vand.u32 4294901760, %v162_v30  ;;  %v1783_v62 = vand.u32 4294901760, %v1782_v15  ;;  %v150_v36 = vld [vmem:[#allocation5 + $0x330] sm:$0xff] }
  0xf9   :  { %1685 = vmatpush.msra.mxu0 %v4430_v26  ;;  %1754 = vmatpush.msra.mxu1 %v1753_v42  ;;  %v4527_v42 = vsub.f32 %v50_v45, %v4502_v16  ;;  %5601 = vst [vmem:[#allocation26_spill] sm:$0xff] %v4530_v14  ;;  %v1794_v43 = vsub.f32 %v4499_v46, %v5604_v37  ;;  %v4560_v37 = vand.u32 4294901760, %v158_v54 }
  0xfa   :  { %1844 = vmatpush.msra.mxu2 %v4438_v47  ;;  %1892 = vmatpush.msra.mxu3 %v4391_v27  ;;  %v1788_v45 = vsub.f32 %v4486_v4, %v5602_v23  ;;  %5603 = vst [vmem:[#allocation27_spill] sm:$0xff] %v4541_v24  ;;  %v700_v15 = vadd.f32 %v4488_v63, %v595_v31  ;;  %v4572_v31 = vand.u32 4294901760, %v154_v5 }
  0xfb   :  { %1687 = vmatpush.msra.mxu0 %v4441_v6  ;;  %1760 = vmatpush.msra.mxu1 %v1759_v18 }
  0xfc   :  { %1847 = vmatpush.msra.mxu2 %v4444_v32  ;;  %1894 = vmatpush.msra.mxu3 %v4406_v53  ;;  %v797_v3 = vpop.f32.mrf.mxu1  ;;  %v872_v52 = vpop.f32.mrf.mxu2 }
  0xfd   :  { %1689 = vmatpush.msra.mxu0 %v4462_v9  ;;  %1766 = vmatpush.msra.mxu1 %v1765_v17  ;;  %v798_v18 = vadd.f32 %v797_v3, %v754_v39  ;;  %v5473_v17 = vand.u32 4294901760, %v4522_v8  ;;  %v4555_v39 = vsub.f32 %v166_v55, %v4532_v28  ;;  %v4565_v55 = vsub.f32 %v162_v30, %v4543_v44 }
  0xfe   :  { %1850 = vmatpush.msra.mxu2 %v4455_v12  ;;  %1896 = vmatpush.msra.mxu3 %v4415_v33  ;;  %v5605_v30 = vand.u32 4294901760, %v4530_v14 }
  0xff   :  { %1691 = vmatpush.msra.mxu0 %v4467_v19  ;;  %1772 = vmatpush.msra.mxu1 %v1771_v1  ;;  %v873_v23 = vadd.f32 %v872_v52, %v798_v18  ;;  %v913_v48 = vpop.f32.mrf.mxu3  ;;  %v1789_v1 = vand.u32 4294901760, %v1788_v45  ;;  %v1800_v63 = vsub.f32 %v4522_v8, %v5473_v17 }
 0x100   :  { %1853 = vmatpush.msra.mxu2 %v4471_v59  ;;  %1898 = vmatpush.msra.mxu3 %v4430_v26  ;;  %v758_v52 = vpop.f32.mrf.mxu0  ;;  %v2088_v45 = vsub.f32 %v4530_v14, %v5605_v30  ;;  %v5607_v30 = vand.u32 4294901760, %v4332_v34  ;;  %v4600_v34 = vand.u32 4294901760, %v146_v50 }
 0x101   :  { %1693 = vmatpush.msra.mxu0 %v4495_v2  ;;  %1778 = vmatpush.msra.mxu1 %v1777_v7  ;;  %v914_v18 = vadd.f32 %v913_v48, %v873_v23  ;;  %v1795_v7 = vand.u32 4294901760, %v1794_v43  ;;  %v5606_v48 = vand.u32 4294901760, %v4527_v42  ;;  %v759_v17 = vadd.f32 %v758_v52, %v700_v15 }
 0x102   :  { %1856 = vmatpush.msra.mxu2 %v4486_v4  ;;  %1900 = vmatpush.msra.mxu3 %v4441_v6  ;;  %v4587_v43 = vand.u32 4294901760, %v150_v36  ;;  %v142_v6 = vld [vmem:[#allocation5 + $0x2f0] sm:$0xff]  ;;  %v4598_v15 = vsub.f32 %v154_v5, %v4572_v31 }
 0x103   :  { %1695 = vmatpush.msra.mxu0 %v4502_v16  ;;  %1784 = vmatpush.msra.mxu1 %v1783_v62  ;;  %v1806_v23 = vsub.f32 %v4527_v42, %v5606_v48  ;;  %3152 = vst [vmem:[#allocation7] sm:$0xff] %v914_v18  ;;  %v4585_v62 = vsub.f32 %v158_v54, %v4560_v37  ;;  %v5608_v48 = vand.u32 4294901760, %v4541_v24  ;;  %v1801_v54 = vand.u32 4294901760, %v1800_v63 }
 0x104   :  { %1859 = vmatpush.msra.mxu2 %v4499_v46  ;;  %1902 = vmatpush.msra.mxu3 %v4462_v9  ;;  %v5611_v63 = vand.u32 4294901760, %v4353_v21  ;;  %v134_v21 = vld [vmem:[#allocation5 + $0x2b0] sm:$0xff] }
 0x105   :  { %1925 = vmatpush.msrb.mxu0 %v5607_v30  ;;  %1790 = vmatpush.msra.mxu1 %v1789_v1  ;;  %v2094_v3 = vsub.f32 %v4541_v24, %v5608_v48  ;;  %v803_v14 = vpop.f32.mrf.mxu1  ;;  %v5609_v30 = vand.u32 4294901760, %v4340_v20  ;;  %v2089_v48 = vand.u32 4294901760, %v2088_v45  ;;  %v1807_v18 = vand.u32 4294901760, %v1806_v23 }
 0x106   :  { %1862 = vmatpush.msra.mxu2 %v4522_v8  ;;  %1904 = vmatpush.msra.mxu3 %v4467_v19  ;;  %v804_v52 = vadd.f32 %v803_v14, %v759_v17  ;;  %v876_v1 = vpop.f32.mrf.mxu2  ;;  %v5610_v24 = vand.u32 4294901760, %v4555_v39  ;;  %v2111_v5 = vand.u32 4294901760, %v4585_v62  ;;  %v4611_v14 = vsub.f32 %v150_v36, %v4587_v43 }
 0x107   :  { %1929 = vmatpush.msrb.mxu0 %v5609_v30  ;;  %1796 = vmatpush.msra.mxu1 %v1795_v7  ;;  %v4613_v20 = vand.u32 4294901760, %v142_v6  ;;  %v2095_v7 = vand.u32 4294901760, %v2094_v3  ;;  %v2117_v36 = vand.u32 4294901760, %v4598_v15  ;;  %v4626_v30 = vand.u32 4294901760, %v138_v38 }
 0x108   :  { %v2100_v9 = vsub.f32 %v4555_v39, %v5610_v24  ;;  %1865 = vmatpush.msra.mxu2 %v4527_v42  ;;  %1906 = vmatpush.msra.mxu3 %v4495_v2  ;;  %v877_v17 = vadd.f32 %v876_v1, %v804_v52  ;;  %v5612_v24 = vand.u32 4294901760, %v4565_v55  ;;  %v4624_v52 = vsub.f32 %v146_v50, %v4600_v34 }
 0x109   :  { %1933 = vmatpush.msrb.mxu0 %v5611_v63  ;;  %v917_v23 = vpop.f32.mrf.mxu3  ;;  %1802 = vmatpush.msra.mxu1 %v1801_v54  ;;  %v5613_v63 = vand.u32 4294901760, %v4366_v56  ;;  %v2112_v54 = vsub.f32 %v4585_v62, %v2111_v5  ;;  %v4636_v50 = vsub.f32 %v142_v6, %v4613_v20  ;;  %v4641_v56 = vand.u32 4294901760, %v134_v21 }
 0x10a   :  { %2037 = vmatpush.msrb.mxu2 %v4504_v10  ;;  %v2106_v45 = vsub.f32 %v4565_v55, %v5612_v24  ;;  %1908 = vmatpush.msra.mxu3 %v4502_v16  ;;  %v918_v1 = vadd.f32 %v917_v23, %v877_v17  ;;  %v2101_v3 = vand.u32 4294901760, %v2100_v9  ;;  %v2123_v24 = vand.u32 4294901760, %v4611_v14 }
 0x10b   :  { %1937 = vmatpush.msrb.mxu0 %v5613_v63  ;;  %1808 = vmatpush.msra.mxu1 %v1807_v18  ;;  %v5614_v17 = vand.u32 4294901760, %v4378_v13  ;;  %v2118_v18 = vsub.f32 %v4598_v15, %v2117_v36  ;;  %v5482_v23 = vand.u32 4294901760, %v4624_v52  ;;  %v4649_v6 = vsub.f32 %v138_v38, %v4626_v30 }
 0x10c   :  { %2039 = vmatpush.msrb.mxu2 %v4514_v0  ;;  %2090 = vmatpush.msrb.mxu3 %v2089_v48  ;;  %3156 = vst [vmem:[#allocation7 + $0x20] sm:$0xff] %v918_v1  ;;  %v130_v48 = vld [vmem:[#allocation5 + $0x290] sm:$0xff]  ;;  %v2107_v9 = vand.u32 4294901760, %v2106_v45  ;;  %v5615_v13 = vand.u32 4294901760, %v4395_v49  ;;  %v2124_v45 = vsub.f32 %v4611_v14, %v2123_v24  ;;  %v2135_v1 = vand.u32 4294901760, %v4636_v50 }
 0x10d   :  { %1941 = vmatpush.msrb.mxu0 %v5614_v17  ;;  %1996 = vmatpush.msrb.mxu1 %v4314_v40  ;;  %v126_v40 = vld [vmem:[#allocation5 + $0x270] sm:$0xff]  ;;  %v4659_v63 = vand.u32 4294901760, %v130_v48  ;;  %v5616_v38 = vand.u32 4294901760, %v4409_v41  ;;  %v2141_v17 = vand.u32 4294901760, %v4649_v6  ;;  %v5617_v41 = vand.u32 4294901760, %v4424_v60 }
 0x10e   :  { %2041 = vmatpush.msrb.mxu2 %v4532_v28  ;;  %2096 = vmatpush.msrb.mxu3 %v2095_v7  ;;  %v2113_v7 = vand.u32 4294901760, %v2112_v54  ;;  %v122_v49 = vld [vmem:[#allocation5 + $0x250] sm:$0xff]  ;;  %v2130_v54 = vsub.f32 %v4624_v52, %v5482_v23  ;;  %v5618_v23 = vand.u32 4294901760, %v4438_v47 }
 0x10f   :  { %1945 = vmatpush.msrb.mxu0 %v5615_v13  ;;  %1998 = vmatpush.msrb.mxu1 %v4323_v11  ;;  %v4665_v11 = vsub.f32 %v134_v21, %v4641_v56  ;;  %v4672_v13 = vand.u32 4294901760, %v126_v40  ;;  %v2136_v21 = vsub.f32 %v4636_v50, %v2135_v1 }
 0x110   :  { %2043 = vmatpush.msrb.mxu2 %v4543_v44  ;;  %2102 = vmatpush.msrb.mxu3 %v2101_v3  ;;  %v2119_v3 = vand.u32 4294901760, %v2118_v18  ;;  %v4684_v18 = vand.u32 4294901760, %v122_v49  ;;  %v2131_v60 = vand.u32 4294901760, %v2130_v54 }
 0x111   :  { %1949 = vmatpush.msrb.mxu0 %v5616_v38  ;;  %2000 = vmatpush.msrb.mxu1 %v4329_v51  ;;  %v2125_v51 = vand.u32 4294901760, %v2124_v45  ;;  %v118_v38 = vld [vmem:[#allocation5 + $0x230] sm:$0xff]  ;;  %v5619_v45 = vand.u32 4294901760, %v4444_v32 }
 0x112   :  { %2045 = vmatpush.msrb.mxu2 %v4560_v37  ;;  %2108 = vmatpush.msrb.mxu3 %v2107_v9  ;;  %v4682_v9 = vsub.f32 %v130_v48, %v4659_v63  ;;  %v4695_v48 = vsub.f32 %v126_v40, %v4672_v13  ;;  %v4700_v47 = vand.u32 4294901760, %v118_v38  ;;  %v4705_v54 = vsub.f32 %v122_v49, %v4684_v18 }
 0x113   :  { %1953 = vmatpush.msrb.mxu0 %v5617_v41  ;;  %2002 = vmatpush.msrb.mxu1 %v4345_v22  ;;  %v2147_v22 = vand.u32 4294901760, %v4665_v11  ;;  %v5620_v40 = vand.u32 4294901760, %v4455_v12  ;;  %v5621_v49 = vand.u32 4294901760, %v4471_v59 }
 0x114   :  { %2047 = vmatpush.msrb.mxu2 %v4572_v31  ;;  %2114 = vmatpush.msrb.mxu3 %v2113_v7  ;;  %v2142_v7 = vsub.f32 %v4649_v6, %v2141_v17  ;;  %v2159_v41 = vand.u32 4294901760, %v4695_v48  ;;  %v4721_v12 = vsub.f32 %v118_v38, %v4700_v47 }
 0x115   :  { %1957 = vmatpush.msrb.mxu0 %v5618_v23  ;;  %2004 = vmatpush.msrb.mxu1 %v4349_v57  ;;  %v114_v57 = vld [vmem:[#allocation5 + $0x210] sm:$0xff]  ;;  %v2137_v23 = vand.u32 4294901760, %v2136_v21  ;;  %v2165_v21 = vand.u32 4294901760, %v4705_v54 }
 0x116   :  { %2049 = vmatpush.msrb.mxu2 %v4587_v43  ;;  %2120 = vmatpush.msrb.mxu3 %v2119_v3  ;;  %v2153_v3 = vand.u32 4294901760, %v4682_v9  ;;  %v2143_v32 = vand.u32 4294901760, %v2142_v7  ;;  %v5623_v7 = vand.u32 4294901760, %v4499_v46 }
 0x117   :  { %1961 = vmatpush.msrb.mxu0 %v5619_v45  ;;  %2006 = vmatpush.msrb.mxu1 %v4363_v29  ;;  %v2148_v29 = vsub.f32 %v4665_v11, %v2147_v22  ;;  %v2166_v45 = vsub.f32 %v4705_v54, %v2165_v21 }
 0x118   :  { %2051 = vmatpush.msrb.mxu2 %v4600_v34  ;;  %2126 = vmatpush.msrb.mxu3 %v2125_v51  ;;  %v4715_v51 = vand.u32 4294901760, %v114_v57 }
 0x119   :  { %1965 = vmatpush.msrb.mxu0 %v5620_v40  ;;  %2008 = vmatpush.msrb.mxu1 %v4382_v58  ;;  %v2154_v58 = vsub.f32 %v4682_v9, %v2153_v3  ;;  %v2149_v59 = vand.u32 4294901760, %v2148_v29  ;;  %v5625_v40 = vld [vmem:[#allocation12_spill] sm:$0xff]  ;;  %v2167_v29 = vand.u32 4294901760, %v2166_v45 }
 0x11a   :  { %2053 = vmatpush.msrb.mxu2 %v4613_v20  ;;  %2132 = vmatpush.msrb.mxu3 %v2131_v60  ;;  %v5622_v60 = vand.u32 4294901760, %v4486_v4  ;;  %v4736_v38 = vsub.f32 %v114_v57, %v4715_v51  ;;  %v2171_v4 = vand.u32 4294901760, %v4721_v12  ;;  %v5624_v57 = vand.u32 4294901760, %v4522_v8  ;;  %v5627_v8 = vld [vmem:[#allocation25_spill] sm:$0xff] }
 0x11b   :  { %1969 = vmatpush.msrb.mxu0 %v5621_v49  ;;  %2010 = vmatpush.msrb.mxu1 %v4391_v27  ;;  %v2160_v27 = vsub.f32 %v4695_v48, %v2159_v41  ;;  %v5628_v49 = vld [vmem:[#allocation26_spill] sm:$0xff] }
 0x11c   :  { %2055 = vmatpush.msrb.mxu2 %v4626_v30  ;;  %2138 = vmatpush.msrb.mxu3 %v2137_v23  ;;  %v2177_v23 = vand.u32 4294901760, %v4736_v38  ;;  %v5634_v45 = vand.u32 4294901760, %v5628_v49 }
 0x11d   :  { %1973 = vmatpush.msrb.mxu0 %v5622_v60  ;;  %2012 = vmatpush.msrb.mxu1 %v4406_v53  ;;  %v2155_v53 = vand.u32 4294901760, %v2154_v58  ;;  %v2161_v46 = vand.u32 4294901760, %v2160_v27  ;;  %v5629_v58 = vld [vmem:[#allocation24_spill] sm:$0xff] }
 0x11e   :  { %2057 = vmatpush.msrb.mxu2 %v4641_v56  ;;  %2144 = vmatpush.msrb.mxu3 %v2143_v32  ;;  %v5626_v32 = vand.u32 4294901760, %v4527_v42  ;;  %v5631_v42 = vld [vmem:[#allocation27_spill] sm:$0xff] }
 0x11f   :  { %1868 = vmatmul.f32.vlgmr.msra.gmra.mxu2 %v3601_v61  ;;  %1977 = vmatpush.msrb.mxu0 %v5623_v7  ;;  %v5632_v7 = vld [vmem:[#allocation18_spill] sm:$0xff] }
 0x120   :  { %2014 = vmatpush.msrb.mxu1 %v4415_v33  ;;  %2059 = vmatpush.msrb.mxu2 %v4659_v63  ;;  %v2172_v33 = vsub.f32 %v4721_v12, %v2171_v4 }
 0x121   :  { %2150 = vmatpush.msrb.mxu3 %v2149_v59  ;;  %1701 = vmatmul.f32.vlgmr.msra.gmra.mxu0 %v3673_v25  ;;  %v5630_v59 = vld [vmem:[#allocation14_spill] sm:$0xff] }
 0x122   :  { %1912 = vmatmul.f32.vlgmr.msra.gmra.mxu3 %v3626_v35  ;;  %1981 = vmatpush.msrb.mxu0 %v5624_v57  ;;  %v2173_v60 = vand.u32 4294901760, %v2172_v33  ;;  %v5635_v57 = vld [vmem:[#allocation13_spill] sm:$0xff]  ;;  %v5639_v33 = vand.u32 4294901760, %v4565_v55 }
 0x123   :  { %2016 = vmatpush.msrb.mxu1 %v4430_v26  ;;  %2061 = vmatpush.msrb.mxu2 %v4672_v13  ;;  %v2178_v26 = vsub.f32 %v4736_v38, %v2177_v23 }
 0x124   :  { %2156 = vmatpush.msrb.mxu3 %v2155_v53  ;;  %1810 = vmatmul.f32.vlgmr.msra.gmra.mxu1 %v5625_v40  ;;  %v5633_v53 = vld [vmem:[#allocation15_spill] sm:$0xff] }
 0x125   :  { %1985 = vmatpush.msrb.mxu0 %v5626_v32  ;;  %2018 = vmatpush.msrb.mxu1 %v5627_v8  ;;  %v2179_v27 = vand.u32 4294901760, %v2178_v26  ;;  %v79_v32 = vld [vmem:[#allocation5 + $0xf8] sm:$0xff] }
 0x126   :  { %2063 = vmatpush.msrb.mxu2 %v4684_v18  ;;  %2162 = vmatpush.msrb.mxu3 %v2161_v46  ;;  %v5637_v46 = vand.u32 4294901760, %v4555_v39 }
 0x127   :  { %2192 = vmatpush.msra.mxu0 %v5628_v49  ;;  %2020 = vmatpush.msrb.mxu1 %v5629_v58  ;;  %v75_v58 = vld [vmem:[#allocation5 + $0xd8] sm:$0xff] }
 0x128   :  { %2065 = vmatpush.msrb.mxu2 %v4700_v47  ;;  %2168 = vmatpush.msrb.mxu3 %v2167_v29 }
 0x129   :  { %1873 = vmatmul.f32.gmra.mxu2 %v5630_v59  ;;  %2195 = vmatpush.msra.mxu0 %v5631_v42  ;;  %v147_v59 = vld [vmem:[#allocation5 + $0x318] sm:$0xff] }
 0x12a   :  { %2022 = vmatpush.msrb.mxu1 %v4467_v19  ;;  %2067 = vmatpush.msrb.mxu2 %v4715_v51  ;;  %v5636_v19 = vand.u32 4294901760, %v5631_v42 }
 0x12b   :  { %2174 = vmatpush.msrb.mxu3 %v2173_v60  ;;  %1709 = vmatmul.f32.gmra.mxu0 %v5632_v7  ;;  %v151_v7 = vld [vmem:[#allocation5 + $0x338] sm:$0xff] }
 0x12c   :  { %1918 = vmatmul.f32.gmra.mxu3 %v5633_v53  ;;  %2198 = vmatpush.msra.mxu0 %v4555_v39  ;;  %v155_v53 = vld [vmem:[#allocation5 + $0x358] sm:$0xff] }
 0x12d   :  { %2297 = vmatpush.msra.mxu2 %v5634_v45  ;;  %2024 = vmatpush.msrb.mxu1 %v4495_v2  ;;  %v5638_v2 = vld [vmem:[#allocation20_spill] sm:$0xff] }
 0x12e   :  { %2180 = vmatpush.msrb.mxu3 %v2179_v27  ;;  %1814 = vmatmul.f32.gmra.mxu1 %v5635_v57  ;;  %v4921_v27 = vand.u32 4294901760, %v79_v32 }
 0x12f   :  { %2201 = vmatpush.msra.mxu0 %v4565_v55  ;;  %2301 = vmatpush.msra.mxu2 %v5636_v19 }
 0x130   :  { %2368 = vmatpush.msra.mxu3 %v4504_v10  ;;  %2026 = vmatpush.msrb.mxu1 %v4502_v16  ;;  %v5640_v16 = vld [vmem:[#allocation16_spill] sm:$0xff] }
 0x131   :  { %2204 = vmatpush.msra.mxu0 %v4585_v62  ;;  %2305 = vmatpush.msra.mxu2 %v5637_v46  ;;  %v103_v62 = vld [vmem:[#allocation5 + $0x1b8] sm:$0xff] }
 0x132   :  { %2250 = vmatpush.msra.mxu1 %v4504_v10  ;;  %2370 = vmatpush.msra.mxu3 %v4514_v0  ;;  %v958_v10 = vpop.f32.mrf.mxu0 }
 0x133   :  { %2073 = vmatmul.f32.vlgmr.msrb.gmra.mxu2 %v5638_v2  ;;  %2207 = vmatpush.msra.mxu0 %v4598_v15  ;;  %v5642_v15 = vld [vmem:[#allocation23_spill] sm:$0xff] }
 0x134   :  { %2252 = vmatpush.msra.mxu1 %v4514_v0  ;;  %2309 = vmatpush.msra.mxu2 %v5639_v33  ;;  %v5641_v0 = vand.u32 4294901760, %v4624_v52  ;;  %v71_v33 = vld [vmem:[#allocation5 + $0xb8] sm:$0xff] }
 0x135   :  { %2372 = vmatpush.msra.mxu3 %v4532_v28  ;;  %1987 = vmatmul.f32.vlgmr.msrb.gmra.mxu0 %v5625_v40 }
 0x136   :  { %2182 = vmatmul.f32.vlgmr.msrb.gmra.mxu3 %v5640_v16  ;;  %2210 = vmatpush.msra.mxu0 %v4611_v14  ;;  %v1125_v39 = vpop.f32.mrf.mxu2 }
 0x137   :  { %2254 = vmatpush.msra.mxu1 %v4532_v28  ;;  %2313 = vmatpush.msra.mxu2 %v2111_v5  ;;  %v111_v28 = vld [vmem:[#allocation5 + $0x1f8] sm:$0xff] }
 0x138   :  { %2374 = vmatpush.msra.mxu3 %v4543_v44  ;;  %2028 = vmatmul.f32.vlgmr.msrb.gmra.mxu1 %v5625_v40  ;;  %v4833_v55 = vand.u32 4294901760, %v111_v28 }
 0x139   :  { %2213 = vmatpush.msra.mxu0 %v4624_v52  ;;  %2256 = vmatpush.msra.mxu1 %v4543_v44  ;;  %v1067_v44 = vpop.f32.mrf.mxu1 }
 0x13a   :  { %2317 = vmatpush.msra.mxu2 %v2117_v36  ;;  %2376 = vmatpush.msra.mxu3 %v4560_v37  ;;  %v4851_v5 = vsub.f32 %v111_v28, %v4833_v55  ;;  %v5643_v36 = vld [vmem:[#allocation11_spill] sm:$0xff] }
 0x13b   :  { %2216 = vmatpush.msra.mxu0 %v4636_v50  ;;  %2258 = vmatpush.msra.mxu1 %v4560_v37  ;;  %v107_v37 = vld [vmem:[#allocation5 + $0x1d8] sm:$0xff] }
 0x13c   :  { %2321 = vmatpush.msra.mxu2 %v2123_v24  ;;  %2378 = vmatpush.msra.mxu3 %v4572_v31  ;;  %v966_v14 = vpop.f32.mrf.mxu0 }
 0x13d   :  { %2219 = vmatpush.msra.mxu0 %v4649_v6  ;;  %2260 = vmatpush.msra.mxu1 %v4572_v31  ;;  %v4837_v31 = vpop.f32.mrf.mxu3 }
 0x13e   :  { %2325 = vmatpush.msra.mxu2 %v5641_v0  ;;  %2380 = vmatpush.msra.mxu3 %v4587_v43 }
 0x13f   :  { %2222 = vmatpush.msra.mxu0 %v4665_v11  ;;  %2262 = vmatpush.msra.mxu1 %v4587_v43  ;;  %v4842_v43 = vand.u32 4294901760, %v107_v37  ;;  %v91_v11 = vld [vmem:[#allocation5 + $0x158] sm:$0xff] }
 0x140   :  { %2329 = vmatpush.msra.mxu2 %v2135_v1  ;;  %2382 = vmatpush.msra.mxu3 %v4600_v34  ;;  %v1130_v1 = vpop.f32.mrf.mxu2 }
 0x141   :  { %2225 = vmatpush.msra.mxu0 %v4682_v9  ;;  %2264 = vmatpush.msra.mxu1 %v4600_v34  ;;  %v4848_v34 = vand.u32 4294901760, %v103_v62  ;;  %v4859_v52 = vsub.f32 %v107_v37, %v4842_v43  ;;  %v1071_v50 = vpop.f32.mrf.mxu1  ;;  %v5644_v9 = vld [vmem:[#allocation17_spill] sm:$0xff] }
 0x142   :  { %2333 = vmatpush.msra.mxu2 %v2141_v17  ;;  %2384 = vmatpush.msra.mxu3 %v4613_v20  ;;  %v1068_v17 = vadd.f32 %v1067_v44, %v958_v10  ;;  %v1072_v60 = vadd.f32 %v1071_v50, %v966_v14  ;;  %v4934_v44 = vand.u32 4294901760, %v75_v58  ;;  %v4949_v50 = vsub.f32 %v79_v32, %v4921_v27  ;;  %v63_v32 = vld [vmem:[#allocation5 + $0x78] sm:$0xff] }
 0x143   :  { %1991 = vmatmul.f32.gmra.mxu0 %v5635_v57  ;;  %2266 = vmatpush.msra.mxu1 %v4613_v20  ;;  %v99_v20 = vld [vmem:[#allocation5 + $0x198] sm:$0xff]  ;;  %v4870_v6 = vsub.f32 %v103_v62, %v4848_v34 }
 0x144   :  { %2228 = vmatpush.msra.mxu0 %v4695_v48  ;;  %2337 = vmatpush.msra.mxu2 %v2147_v22  ;;  %v4864_v24 = vand.u32 4294901760, %v99_v20  ;;  %v5488_v22 = vand.u32 4294901760, %v4859_v52  ;;  %v87_v48 = vld [vmem:[#allocation5 + $0x138] sm:$0xff]  ;;  %v1131_v14 = vadd.f32 %v1130_v1, %v1072_v60 }
 0x145   :  { %2386 = vmatpush.msra.mxu3 %v4626_v30  ;;  %2268 = vmatpush.msra.mxu1 %v4626_v30  ;;  %v95_v30 = vld [vmem:[#allocation5 + $0x178] sm:$0xff] }
 0x146   :  { %2231 = vmatpush.msra.mxu0 %v4705_v54  ;;  %2341 = vmatpush.msra.mxu2 %v2153_v3  ;;  %v4882_v3 = vand.u32 4294901760, %v91_v11  ;;  %v4885_v54 = vsub.f32 %v99_v20, %v4864_v24  ;;  %v67_v62 = vld [vmem:[#allocation5 + $0x98] sm:$0xff] }
 0x147   :  { %2388 = vmatpush.msra.mxu3 %v4641_v56  ;;  %2081 = vmatmul.f32.gmra.mxu2 %v5642_v15  ;;  %v4960_v1 = vand.u32 4294901760, %v67_v62 }
 0x148   :  { %2234 = vmatpush.msra.mxu0 %v4721_v12  ;;  %2270 = vmatpush.msra.mxu1 %v4641_v56  ;;  %v5489_v56 = vand.u32 4294901760, %v4851_v5  ;;  %v5487_v12 = vand.u32 4294901760, %v4870_v6  ;;  %v5485_v26 = vand.u32 4294901760, %v4885_v54  ;;  %v4914_v49 = vsub.f32 %v91_v11, %v4882_v3 }
 0x149   :  { %2345 = vmatpush.msra.mxu2 %v2159_v41  ;;  %2390 = vmatpush.msra.mxu3 %v4659_v63  ;;  %v1285_v10 = vpop.f32.mrf.mxu1  ;;  %5646 = vst [vmem:[#allocation12_spill] sm:$0xff] %v4960_v1 }
 0x14a   :  { %2186 = vmatmul.f32.gmra.mxu3 %v5643_v36  ;;  %2237 = vmatpush.msra.mxu0 %v4736_v38  ;;  %v2460_v41 = vsub.f32 %v4851_v5, %v5489_v56  ;;  %v2466_v38 = vsub.f32 %v4859_v52, %v5488_v22  ;;  %v4932_v28 = vpop.f32.mrf.mxu2  ;;  %v2478_v37 = vsub.f32 %v4885_v54, %v5485_v26  ;;  %v4982_v26 = vand.u32 4294901760, %v63_v32 }
 0x14b   :  { %2272 = vmatpush.msra.mxu1 %v4659_v63  ;;  %2349 = vmatpush.msra.mxu2 %v2165_v21  ;;  %v4874_v63 = vand.u32 4294901760, %v95_v30  ;;  %v83_v21 = vld [vmem:[#allocation5 + $0x118] sm:$0xff] }
 0x14c   :  { %2392 = vmatpush.msra.mxu3 %v4672_v13  ;;  %2032 = vmatmul.f32.gmra.mxu1 %v5635_v57  ;;  %v4910_v8 = vand.u32 4294901760, %v83_v21  ;;  %v2461_v42 = vand.u32 4294901760, %v2460_v41  ;;  %v2467_v0 = vand.u32 4294901760, %v2466_v38  ;;  %v5647_v38 = vld [vmem:[#allocation21_spill] sm:$0xff]  ;;  %5648 = vst [vmem:[#allocation25_spill] sm:$0xff] %v4982_v26  ;;  %v159_v57 = vld [vmem:[#allocation5 + $0x378] sm:$0xff] }
 0x14d   :  { %2240 = vmatmul.f32.vlgmr.msra.gmra.mxu0 %v5644_v9  ;;  %2274 = vmatpush.msra.mxu1 %v4672_v13  ;;  %v4887_v13 = vpop.f32.mrf.mxu3  ;;  %v4901_v29 = vsub.f32 %v95_v30, %v4874_v63  ;;  %v4946_v30 = vand.u32 4294901760, %v71_v33 }
 0x14e   :  { %2409 = vmatpush.msrb.mxu0 %v4833_v55  ;;  %2353 = vmatpush.msra.mxu2 %v2171_v4  ;;  %v4898_v4 = vand.u32 4294901760, %v87_v48 }
 0x14f   :  { %2394 = vmatpush.msra.mxu3 %v4684_v18  ;;  %2276 = vmatpush.msra.mxu1 %v4684_v18  ;;  %v1126_v18 = vadd.f32 %v1125_v39, %v1068_v17  ;;  %v5483_v19 = vand.u32 4294901760, %v4901_v29  ;;  %v5645_v39 = vld [vmem:[#allocation19_spill] sm:$0xff] }
 0x150   :  { %2411 = vmatpush.msrb.mxu0 %v4842_v43  ;;  %2357 = vmatpush.msra.mxu2 %v2177_v23  ;;  %v1244_v23 = vpop.f32.mrf.mxu0  ;;  %v4928_v46 = vsub.f32 %v87_v48, %v4898_v4 }
 0x151   :  { %2396 = vmatpush.msra.mxu3 %v4700_v47  ;;  %2359 = vmatmul.f32.vlgmr.msra.gmra.mxu2 %v5640_v16  ;;  %v1170_v45 = vadd.f32 %v4837_v31, %v1126_v18  ;;  %v5484_v31 = vand.u32 4294901760, %v4914_v49  ;;  %v2484_v17 = vsub.f32 %v4901_v29, %v5483_v19 }
 0x152   :  { %2413 = vmatpush.msrb.mxu0 %v4848_v34  ;;  %2564 = vmatpush.msrb.mxu2 %v4851_v5  ;;  %v5486_v41 = vand.u32 4294901760, %v4928_v46 }
 0x153   :  { %2278 = vmatpush.msra.mxu1 %v4700_v47  ;;  %2398 = vmatpush.msra.mxu3 %v4715_v51  ;;  %v2472_v47 = vsub.f32 %v4870_v6, %v5487_v12  ;;  %v1245_v11 = vadd.f32 %v1244_v23, %v1170_v45  ;;  %v2479_v23 = vand.u32 4294901760, %v2478_v37  ;;  %v2490_v60 = vsub.f32 %v4914_v49, %v5484_v31  ;;  %v5649_v12 = vld [vmem:[#allocation22_spill] sm:$0xff] }
 0x154   :  { %2400 = vmatmul.f32.vlgmr.msra.gmra.mxu3 %v5640_v16  ;;  %2415 = vmatpush.msrb.mxu0 %v4864_v24  ;;  %v1176_v45 = vadd.f32 %v4887_v13, %v1131_v14  ;;  %v2485_v19 = vand.u32 4294901760, %v2484_v17  ;;  %v2496_v31 = vsub.f32 %v4928_v46, %v5486_v41  ;;  %v4990_v14 = vsub.f32 %v67_v62, %v4960_v1 }
 0x155   :  { %2567 = vmatpush.msrb.mxu2 %v4859_v52  ;;  %2622 = vmatpush.msrb.mxu3 %v4833_v55  ;;  %v2473_v20 = vand.u32 4294901760, %v2472_v47  ;;  %v4956_v48 = vpop.f32.mrf.mxu3  ;;  %v59_v47 = vld [vmem:[#allocation5 + $0x58] sm:$0xff]  ;;  %v1286_v37 = vadd.f32 %v1285_v10, %v1245_v11  ;;  %v2491_v17 = vand.u32 4294901760, %v2490_v60 }
 0x156   :  { %2280 = vmatpush.msra.mxu1 %v4715_v51  ;;  %2417 = vmatpush.msrb.mxu0 %v4874_v63  ;;  %v4943_v51 = vsub.f32 %v83_v21, %v4910_v8  ;;  %v4963_v21 = vsub.f32 %v75_v58, %v4934_v44  ;;  %v5491_v58 = vand.u32 4294901760, %v4949_v50  ;;  %v4986_v13 = vand.u32 4294901760, %v59_v47 }
 0x157   :  { %2284 = vmatmul.f32.vlgmr.msra.gmra.mxu1 %v5645_v39  ;;  %2570 = vmatpush.msrb.mxu2 %v4870_v6  ;;  %v1331_v60 = vadd.f32 %v4932_v28, %v1286_v37  ;;  %v5007_v39 = vsub.f32 %v63_v32, %v4982_v26 }
 0x158   :  { %2462 = vmatpush.msrb.mxu1 %v2461_v42  ;;  %2624 = vmatpush.msrb.mxu3 %v4842_v43  ;;  %v1248_v18 = vpop.f32.mrf.mxu0  ;;  %v5490_v42 = vand.u32 4294901760, %v4943_v51  ;;  %v2508_v62 = vsub.f32 %v4949_v50, %v5491_v58  ;;  %v5018_v28 = vsub.f32 %v59_v47, %v4986_v13 }
 0x159   :  { %2419 = vmatpush.msrb.mxu0 %v4882_v3  ;;  %2573 = vmatpush.msrb.mxu2 %v4885_v54  ;;  %v1249_v22 = vadd.f32 %v1248_v18, %v1176_v45  ;;  %v5650_v45 = vand.u32 4294901760, %v4963_v21  ;;  %v1440_v15 = vadd.f32 %v4956_v48, %v1331_v60 }
 0x15a   :  { %2468 = vmatpush.msrb.mxu1 %v2467_v0  ;;  %2626 = vmatpush.msrb.mxu3 %v4848_v34  ;;  %v4975_v0 = vsub.f32 %v71_v33, %v4946_v30  ;;  %v2502_v41 = vsub.f32 %v4943_v51, %v5490_v42  ;;  %v51_v33 = vld [vmem:[#allocation5 + $0x18] sm:$0xff] }
 0x15b   :  { %2245 = vmatmul.f32.gmra.mxu0 %v5647_v38  ;;  %2363 = vmatmul.f32.gmra.mxu2 %v5643_v36  ;;  %v2497_v38 = vand.u32 4294901760, %v2496_v31  ;;  %v2514_v58 = vsub.f32 %v4963_v21, %v5650_v45  ;;  %v171_v31 = vld [vmem:[#allocation5 + $0x3d8] sm:$0xff]  ;;  %v5021_v37 = vand.u32 4294901760, %v51_v33 }
 0x15c   :  { %2421 = vmatpush.msrb.mxu0 %v4898_v4  ;;  %2474 = vmatpush.msrb.mxu1 %v2473_v20  ;;  %v55_v20 = vld [vmem:[#allocation5 + $0x38] sm:$0xff]  ;;  %v2503_v32 = vand.u32 4294901760, %v2502_v41  ;;  %v5651_v45 = vand.u32 4294901760, %v4975_v0  ;;  %v5036_v16 = vand.u32 4294901760, %v171_v31 }
 0x15d   :  { %2576 = vmatpush.msrb.mxu2 %v4901_v29  ;;  %2628 = vmatpush.msrb.mxu3 %v4864_v24  ;;  %v1289_v10 = vpop.f32.mrf.mxu1  ;;  %v5004_v42 = vand.u32 4294901760, %v55_v20  ;;  %v163_v41 = vld [vmem:[#allocation5 + $0x398] sm:$0xff] }
 0x15e   :  { %2404 = vmatmul.f32.gmra.mxu3 %v5643_v36  ;;  %2423 = vmatpush.msrb.mxu0 %v4910_v8  ;;  %v1338_v11 = vpop.f32.mrf.mxu2  ;;  %v1290_v47 = vadd.f32 %v1289_v10, %v1249_v22  ;;  %v167_v36 = vld [vmem:[#allocation5 + $0x3b8] sm:$0xff]  ;;  %v5652_v22 = vand.u32 4294901760, %v4990_v14 }
 0x15f   :  { %2480 = vmatpush.msrb.mxu1 %v2479_v23  ;;  %2579 = vmatpush.msrb.mxu2 %v4914_v49  ;;  %v175_v23 = vld [vmem:[#allocation5 + $0x3f8] sm:$0xff] }
 0x160   :  { %2630 = vmatpush.msrb.mxu3 %v4874_v63  ;;  %2290 = vmatmul.f32.gmra.mxu1 %v5649_v12  ;;  %v5023_v56 = vand.u32 4294901760, %v175_v23  ;;  %v2509_v12 = vand.u32 4294901760, %v2508_v62  ;;  %v1497_v9 = vpop.f32.mrf.mxu0  ;;  %v2515_v62 = vand.u32 4294901760, %v2514_v58  ;;  %v2526_v10 = vsub.f32 %v4990_v14, %v5652_v22 }
 0x161   :  { %2425 = vmatpush.msrb.mxu0 %v4921_v27  ;;  %2486 = vmatpush.msrb.mxu1 %v2485_v19  ;;  %v5009_v18 = vpop.f32.mrf.mxu3  ;;  %v2520_v19 = vsub.f32 %v4975_v0, %v5651_v45  ;;  %v5051_v45 = vand.u32 4294901760, %v167_v36  ;;  %v1339_v22 = vadd.f32 %v1338_v11, %v1290_v47  ;;  %v5068_v47 = vand.u32 4294901760, %v163_v41 }
 0x162   :  { %2582 = vmatpush.msrb.mxu2 %v4928_v46  ;;  %2632 = vmatpush.msrb.mxu3 %v4882_v3  ;;  %v5049_v60 = vsub.f32 %v175_v23, %v5023_v56  ;;  %v5061_v23 = vsub.f32 %v171_v31, %v5036_v16  ;;  %v2527_v11 = vand.u32 4294901760, %v2526_v10 }
 0x163   :  { %2427 = vmatpush.msrb.mxu0 %v4934_v44  ;;  %2492 = vmatpush.msrb.mxu1 %v2491_v17  ;;  %v5034_v17 = vsub.f32 %v55_v20, %v5004_v42  ;;  %v5046_v20 = vsub.f32 %v51_v33, %v5021_v37  ;;  %v2521_v58 = vand.u32 4294901760, %v2520_v19  ;;  %v5656_v19 = vand.u32 4294901760, %v5018_v28 }
 0x164   :  { %2585 = vmatpush.msrb.mxu2 %v4943_v51  ;;  %2634 = vmatpush.msrb.mxu3 %v4898_v4  ;;  %5653 = vst [vmem:[#allocation26_spill] sm:$0xff] %v5049_v60  ;;  %v1444_v10 = vadd.f32 %v5009_v18, %v1339_v22  ;;  %v5089_v18 = vsub.f32 %v163_v41, %v5068_v47  ;;  %v5091_v22 = vand.u32 4294901760, %v155_v53 }
 0x165   :  { %2429 = vmatpush.msrb.mxu0 %v4946_v30  ;;  %2498 = vmatpush.msrb.mxu1 %v2497_v38  ;;  %v1498_v38 = vadd.f32 %v1497_v9, %v1440_v15  ;;  %v5654_v15 = vand.u32 4294901760, %v5007_v39  ;;  %5655 = vst [vmem:[#allocation24_spill] sm:$0xff] %v5061_v23  ;;  %v5657_v31 = vand.u32 4294901760, %v5034_v17 }
 0x166   :  { %2588 = vmatpush.msrb.mxu2 %v4949_v50  ;;  %2636 = vmatpush.msrb.mxu3 %v4910_v8 }
 0x167   :  { %2431 = vmatpush.msrb.mxu0 %v4960_v1  ;;  %2504 = vmatpush.msrb.mxu1 %v2503_v32  ;;  %v2532_v9 = vsub.f32 %v5007_v39, %v5654_v15 }
 0x168   :  { %2591 = vmatpush.msrb.mxu2 %v4963_v21  ;;  %2638 = vmatpush.msrb.mxu3 %v4921_v27  ;;  %v1541_v48 = vpop.f32.mrf.mxu1  ;;  %v1616_v2 = vpop.f32.mrf.mxu2 }
 0x169   :  { %2433 = vmatpush.msrb.mxu0 %v4982_v26  ;;  %2510 = vmatpush.msrb.mxu1 %v2509_v12  ;;  %v1542_v32 = vadd.f32 %v1541_v48, %v1498_v38  ;;  %v2538_v12 = vsub.f32 %v5018_v28, %v5656_v19  ;;  %v5074_v48 = vsub.f32 %v167_v36, %v5051_v45  ;;  %v5079_v19 = vand.u32 4294901760, %v159_v57 }
 0x16a   :  { %2594 = vmatpush.msrb.mxu2 %v4975_v0  ;;  %2640 = vmatpush.msrb.mxu3 %v4934_v44  ;;  %v2544_v36 = vsub.f32 %v5034_v17, %v5657_v31 }
 0x16b   :  { %2435 = vmatpush.msrb.mxu0 %v4986_v13  ;;  %2516 = vmatpush.msrb.mxu1 %v2515_v62  ;;  %v1617_v38 = vadd.f32 %v1616_v2, %v1542_v32  ;;  %v1657_v33 = vpop.f32.mrf.mxu3  ;;  %v2533_v62 = vand.u32 4294901760, %v2532_v9  ;;  %v5658_v9 = vand.u32 4294901760, %v5049_v60 }
 0x16c   :  { %2597 = vmatpush.msrb.mxu2 %v4990_v14  ;;  %2642 = vmatpush.msrb.mxu3 %v4946_v30  ;;  %v1502_v32 = vpop.f32.mrf.mxu0 }
 0x16d   :  { %2437 = vmatpush.msrb.mxu0 %v5004_v42  ;;  %2522 = vmatpush.msrb.mxu1 %v2521_v58  ;;  %v1658_v15 = vadd.f32 %v1657_v33, %v1617_v38  ;;  %v2539_v58 = vand.u32 4294901760, %v2538_v12  ;;  %v2832_v31 = vsub.f32 %v5049_v60, %v5658_v9  ;;  %v5659_v33 = vand.u32 4294901760, %v5046_v20 }
 0x16e   :  { %2600 = vmatpush.msrb.mxu2 %v5007_v39  ;;  %2644 = vmatpush.msrb.mxu3 %v4960_v1  ;;  %v1503_v41 = vadd.f32 %v1502_v32, %v1444_v10  ;;  %v5106_v12 = vand.u32 4294901760, %v151_v7  ;;  %v5660_v9 = vand.u32 4294901760, %v4851_v5  ;;  %v2545_v60 = vand.u32 4294901760, %v2544_v36  ;;  %v143_v1 = vld [vmem:[#allocation5 + $0x2f8] sm:$0xff] }
 0x16f   :  { %2439 = vmatpush.msrb.mxu0 %v5021_v37  ;;  %2528 = vmatpush.msrb.mxu1 %v2527_v11  ;;  %v2550_v38 = vsub.f32 %v5046_v20, %v5659_v33  ;;  %3153 = vst [vmem:[#allocation7 + $0x8] sm:$0xff] %v1658_v15  ;;  %v5104_v11 = vsub.f32 %v159_v57, %v5079_v19  ;;  %v5661_v33 = vand.u32 4294901760, %v5061_v23  ;;  %v5119_v5 = vand.u32 4294901760, %v147_v59 }
 0x170   :  { %2603 = vmatpush.msrb.mxu2 %v5018_v28  ;;  %2646 = vmatpush.msrb.mxu3 %v4982_v26  ;;  %v5117_v10 = vsub.f32 %v155_v53, %v5091_v22  ;;  %v5662_v36 = vand.u32 4294901760, %v4859_v52  ;;  %v5132_v57 = vand.u32 4294901760, %v143_v1  ;;  %v139_v52 = vld [vmem:[#allocation5 + $0x2d8] sm:$0xff] }
 0x171   :  { %2669 = vmatpush.msra.mxu0 %v5660_v9  ;;  %2534 = vmatpush.msrb.mxu1 %v2533_v62  ;;  %v2838_v15 = vsub.f32 %v5061_v23, %v5661_v33  ;;  %v1547_v2 = vpop.f32.mrf.mxu1  ;;  %v2833_v9 = vand.u32 4294901760, %v2832_v31  ;;  %v2551_v33 = vand.u32 4294901760, %v2550_v38  ;;  %v5663_v23 = vand.u32 4294901760, %v5074_v48 }
 0x172   :  { %2606 = vmatpush.msrb.mxu2 %v5034_v17  ;;  %2648 = vmatpush.msrb.mxu3 %v4986_v13  ;;  %v1548_v32 = vadd.f32 %v1547_v2, %v1503_v41  ;;  %v1620_v62 = vpop.f32.mrf.mxu2  ;;  %v2855_v53 = vand.u32 4294901760, %v5104_v11  ;;  %v5130_v2 = vsub.f32 %v151_v7, %v5106_v12  ;;  %v5665_v38 = vand.u32 4294901760, %v5089_v18 }
 0x173   :  { %2673 = vmatpush.msra.mxu0 %v5662_v36  ;;  %2540 = vmatpush.msrb.mxu1 %v2539_v58  ;;  %v2844_v26 = vsub.f32 %v5074_v48, %v5663_v23  ;;  %v5664_v58 = vand.u32 4294901760, %v4870_v6  ;;  %v2839_v31 = vand.u32 4294901760, %v2838_v15  ;;  %v5666_v6 = vand.u32 4294901760, %v4885_v54 }
 0x174   :  { %2609 = vmatpush.msrb.mxu2 %v5046_v20  ;;  %2650 = vmatpush.msrb.mxu3 %v5004_v42  ;;  %v1621_v41 = vadd.f32 %v1620_v62, %v1548_v32  ;;  %v2850_v36 = vsub.f32 %v5089_v18, %v5665_v38  ;;  %v5143_v32 = vsub.f32 %v147_v59, %v5119_v5  ;;  %v5148_v15 = vand.u32 4294901760, %v139_v52 }
 0x175   :  { %2677 = vmatpush.msra.mxu0 %v5664_v58  ;;  %v1661_v23 = vpop.f32.mrf.mxu3  ;;  %2546 = vmatpush.msrb.mxu1 %v2545_v60  ;;  %v135_v60 = vld [vmem:[#allocation5 + $0x2b8] sm:$0xff]  ;;  %v2845_v58 = vand.u32 4294901760, %v2844_v26  ;;  %v2856_v38 = vsub.f32 %v5104_v11, %v2855_v53  ;;  %v2867_v7 = vand.u32 4294901760, %v5130_v2  ;;  %v5155_v59 = vsub.f32 %v143_v1, %v5132_v57 }
 0x176   :  { %2781 = vmatpush.msra.mxu2 %v5023_v56  ;;  %2652 = vmatpush.msrb.mxu3 %v5021_v37  ;;  %v1662_v62 = vadd.f32 %v1661_v23, %v1621_v41  ;;  %v5667_v54 = vand.u32 4294901760, %v4901_v29  ;;  %v131_v41 = vld [vmem:[#allocation5 + $0x298] sm:$0xff]  ;;  %v2851_v26 = vand.u32 4294901760, %v2850_v36  ;;  %v2873_v23 = vand.u32 4294901760, %v5143_v32 }
 0x177   :  { %2681 = vmatpush.msra.mxu0 %v5666_v6  ;;  %2552 = vmatpush.msrb.mxu1 %v2551_v33  ;;  %v5669_v1 = vand.u32 4294901760, %v4914_v49  ;;  %v127_v29 = vld [vmem:[#allocation5 + $0x278] sm:$0xff]  ;;  %v2868_v36 = vsub.f32 %v5130_v2, %v2867_v7  ;;  %v2879_v6 = vand.u32 4294901760, %v5155_v59  ;;  %v5670_v49 = vand.u32 4294901760, %v4928_v46 }
 0x178   :  { %2783 = vmatpush.msra.mxu2 %v5036_v16  ;;  %2834 = vmatpush.msra.mxu3 %v2833_v9  ;;  %3157 = vst [vmem:[#allocation7 + $0x28] sm:$0xff] %v1662_v62  ;;  %v5668_v9 = vand.u32 4294901760, %v5117_v10  ;;  %v5165_v62 = vand.u32 4294901760, %v135_v60 }
 0x179   :  { %2685 = vmatpush.msra.mxu0 %v5667_v54  ;;  %2740 = vmatpush.msra.mxu1 %v4833_v55  ;;  %v5171_v55 = vsub.f32 %v139_v52, %v5148_v15  ;;  %v5178_v54 = vand.u32 4294901760, %v131_v41  ;;  %v2874_v52 = vsub.f32 %v5143_v32, %v2873_v23  ;;  %v2869_v46 = vand.u32 4294901760, %v2868_v36 }
 0x17a   :  { %2785 = vmatpush.msra.mxu2 %v5051_v45  ;;  %2840 = vmatpush.msra.mxu3 %v2839_v31  ;;  %v2862_v33 = vsub.f32 %v5117_v10, %v5668_v9  ;;  %v2857_v31 = vand.u32 4294901760, %v2856_v38  ;;  %v5190_v38 = vand.u32 4294901760, %v127_v29  ;;  %v123_v9 = vld [vmem:[#allocation5 + $0x258] sm:$0xff] }
 0x17b   :  { %2689 = vmatpush.msra.mxu0 %v5669_v1  ;;  %2742 = vmatpush.msra.mxu1 %v4842_v43  ;;  %v5671_v1 = vand.u32 4294901760, %v4943_v51  ;;  %v5206_v51 = vand.u32 4294901760, %v123_v9 }
 0x17c   :  { %2787 = vmatpush.msra.mxu2 %v5068_v47  ;;  %2846 = vmatpush.msra.mxu3 %v2845_v58  ;;  %v2863_v43 = vand.u32 4294901760, %v2862_v33  ;;  %v5188_v58 = vsub.f32 %v135_v60, %v5165_v62  ;;  %v5201_v60 = vsub.f32 %v131_v41, %v5178_v54  ;;  %v5672_v33 = vand.u32 4294901760, %v4949_v50  ;;  %v115_v50 = vld [vmem:[#allocation5 + $0x218] sm:$0xff] }
 0x17d   :  { %2693 = vmatpush.msra.mxu0 %v5670_v49  ;;  %2744 = vmatpush.msra.mxu1 %v4848_v34  ;;  %v2885_v34 = vand.u32 4294901760, %v5171_v55  ;;  %v5211_v49 = vsub.f32 %v127_v29, %v5190_v38  ;;  %v5673_v41 = vand.u32 4294901760, %v4963_v21  ;;  %v5674_v29 = vand.u32 4294901760, %v4975_v0 }
 0x17e   :  { %2789 = vmatpush.msra.mxu2 %v5079_v19  ;;  %2852 = vmatpush.msra.mxu3 %v2851_v26  ;;  %v2880_v26 = vsub.f32 %v5155_v59, %v2879_v6  ;;  %v2891_v36 = vand.u32 4294901760, %v5188_v58 }
 0x17f   :  { %2697 = vmatpush.msra.mxu0 %v5671_v1  ;;  %2746 = vmatpush.msra.mxu1 %v4864_v24  ;;  %v119_v24 = vld [vmem:[#allocation5 + $0x238] sm:$0xff] }
 0x180   :  { %2791 = vmatpush.msra.mxu2 %v5091_v22  ;;  %2858 = vmatpush.msra.mxu3 %v2857_v31  ;;  %v2875_v31 = vand.u32 4294901760, %v2874_v52  ;;  %v2897_v52 = vand.u32 4294901760, %v5201_v60  ;;  %v5221_v1 = vand.u32 4294901760, %v119_v24  ;;  %v2892_v21 = vsub.f32 %v5188_v58, %v2891_v36 }
 0x181   :  { %2701 = vmatpush.msra.mxu0 %v5672_v33  ;;  %2748 = vmatpush.msra.mxu1 %v4874_v63  ;;  %v2886_v63 = vsub.f32 %v5171_v55, %v2885_v34  ;;  %v5675_v33 = vand.u32 4294901760, %v4990_v14 }
 0x182   :  { %2793 = vmatpush.msra.mxu2 %v5106_v12  ;;  %2864 = vmatpush.msra.mxu3 %v2863_v43  ;;  %v2881_v43 = vand.u32 4294901760, %v2880_v26  ;;  %v5234_v26 = vand.u32 4294901760, %v115_v50  ;;  %v2898_v0 = vsub.f32 %v5201_v60, %v2897_v52 }
 0x183   :  { %2705 = vmatpush.msra.mxu0 %v5673_v41  ;;  %2750 = vmatpush.msra.mxu1 %v4882_v3  ;;  %v5227_v3 = vsub.f32 %v123_v9, %v5206_v51  ;;  %v5244_v9 = vsub.f32 %v119_v24, %v5221_v1 }
 0x184   :  { %2795 = vmatpush.msra.mxu2 %v5119_v5  ;;  %2870 = vmatpush.msra.mxu3 %v2869_v46  ;;  %v2903_v46 = vand.u32 4294901760, %v5211_v49 }
 0x185   :  { %2709 = vmatpush.msra.mxu0 %v5674_v29  ;;  %2752 = vmatpush.msra.mxu1 %v4898_v4  ;;  %v2887_v4 = vand.u32 4294901760, %v2886_v63  ;;  %v2909_v14 = vand.u32 4294901760, %v5227_v3  ;;  %v5256_v63 = vsub.f32 %v115_v50, %v5234_v26  ;;  %v5679_v50 = vand.u32 4294901760, %v5046_v20 }
 0x186   :  { %2797 = vmatpush.msra.mxu2 %v5132_v57  ;;  %2876 = vmatpush.msra.mxu3 %v2875_v31  ;;  %v5676_v31 = vand.u32 4294901760, %v5007_v39  ;;  %v2904_v41 = vsub.f32 %v5211_v49, %v2903_v46  ;;  %v2899_v39 = vand.u32 4294901760, %v2898_v0  ;;  %v5685_v0 = vld [vmem:[#allocation18_spill] sm:$0xff] }
 0x187   :  { %2713 = vmatpush.msra.mxu0 %v5675_v33  ;;  %2754 = vmatpush.msra.mxu1 %v4910_v8  ;;  %v2893_v8 = vand.u32 4294901760, %v2892_v21  ;;  %v2910_v24 = vsub.f32 %v5227_v3, %v2909_v14  ;;  %v5682_v21 = vld [vmem:[#allocation14_spill] sm:$0xff]  ;;  %v5683_v33 = vld [vmem:[#allocation25_spill] sm:$0xff] }
 0x188   :  { %2799 = vmatpush.msra.mxu2 %v5148_v15  ;;  %2882 = vmatpush.msra.mxu3 %v2881_v43  ;;  %v5680_v43 = vld [vmem:[#allocation12_spill] sm:$0xff] }
 0x189   :  { %2612 = vmatmul.f32.vlgmr.msrb.gmra.mxu2 %v3601_v61  ;;  %2717 = vmatpush.msra.mxu0 %v5676_v31  ;;  %v5677_v61 = vand.u32 4294901760, %v5018_v28  ;;  %v5678_v28 = vand.u32 4294901760, %v5034_v17  ;;  %v2911_v29 = vand.u32 4294901760, %v2910_v24  ;;  %v5681_v17 = vld [vmem:[#allocation26_spill] sm:$0xff]  ;;  %v5686_v31 = vld [vmem:[#allocation15_spill] sm:$0xff]  ;;  %v5692_v24 = vand.u32 4294901760, %v5089_v18 }
 0x18a   :  { %2756 = vmatpush.msra.mxu1 %v4921_v27  ;;  %2801 = vmatpush.msra.mxu2 %v5165_v62  ;;  %v2915_v27 = vand.u32 4294901760, %v5244_v9 }
 0x18b   :  { %2888 = vmatpush.msra.mxu3 %v2887_v4  ;;  %2445 = vmatmul.f32.vlgmr.msrb.gmra.mxu0 %v3673_v25  ;;  %v2905_v25 = vand.u32 4294901760, %v2904_v41  ;;  %v5684_v4 = vld [vmem:[#allocation24_spill] sm:$0xff]  ;;  %v5687_v41 = vand.u32 4294901760, %v5681_v17 }
 0x18c   :  { %2656 = vmatmul.f32.vlgmr.msrb.gmra.mxu3 %v3626_v35  ;;  %2721 = vmatpush.msra.mxu0 %v5677_v61  ;;  %v2921_v35 = vand.u32 4294901760, %v5256_v63  ;;  %v5688_v61 = vld [vmem:[#allocation13_spill] sm:$0xff] }
 0x18d   :  { %2758 = vmatpush.msra.mxu1 %v4934_v44  ;;  %2803 = vmatpush.msra.mxu2 %v5178_v54  ;;  %v2916_v44 = vsub.f32 %v5244_v9, %v2915_v27 }
 0x18e   :  { %2894 = vmatpush.msra.mxu3 %v2893_v8  ;;  %2554 = vmatmul.f32.vlgmr.msrb.gmra.mxu1 %v5625_v40 }
 0x18f   :  { %2725 = vmatpush.msra.mxu0 %v5678_v28  ;;  %2760 = vmatpush.msra.mxu1 %v4946_v30  ;;  %v2922_v30 = vsub.f32 %v5256_v63, %v2921_v35  ;;  %v2917_v20 = vand.u32 4294901760, %v2916_v44 }
 0x190   :  { %2805 = vmatpush.msra.mxu2 %v5190_v38  ;;  %2900 = vmatpush.msra.mxu3 %v2899_v39  ;;  %v5689_v39 = vand.u32 4294901760, %v5684_v4 }
 0x191   :  { %2729 = vmatpush.msra.mxu0 %v5679_v50  ;;  %2762 = vmatpush.msra.mxu1 %v5680_v43  ;;  %v2923_v8 = vand.u32 4294901760, %v2922_v30 }
 0x192   :  { %2807 = vmatpush.msra.mxu2 %v5206_v51  ;;  %2906 = vmatpush.msra.mxu3 %v2905_v25 }
 0x193   :  { %2936 = vmatpush.msrb.mxu0 %v5681_v17  ;;  %2617 = vmatmul.f32.gmra.mxu2 %v5682_v21 }
 0x194   :  { %2764 = vmatpush.msra.mxu1 %v5683_v33  ;;  %2809 = vmatpush.msra.mxu2 %v5221_v1 }
 0x195   :  { %2912 = vmatpush.msra.mxu3 %v2911_v29  ;;  %2939 = vmatpush.msrb.mxu0 %v5684_v4 }
 0x196   :  { %2453 = vmatmul.f32.gmra.mxu0 %v5685_v0  ;;  %2662 = vmatmul.f32.gmra.mxu3 %v5686_v31 }
 0x197   :  { %2766 = vmatpush.msra.mxu1 %v4986_v13  ;;  %2811 = vmatpush.msra.mxu2 %v5234_v26  ;;  %v5690_v13 = vand.u32 4294901760, %v5074_v48 }
 0x198   :  { %2918 = vmatpush.msra.mxu3 %v2917_v20  ;;  %2942 = vmatpush.msrb.mxu0 %v5074_v48 }
 0x199   :  { %3041 = vmatpush.msrb.mxu2 %v5687_v41  ;;  %2558 = vmatmul.f32.gmra.mxu1 %v5688_v61 }
 0x19a   :  { %2768 = vmatpush.msra.mxu1 %v5004_v42  ;;  %2924 = vmatpush.msra.mxu3 %v2923_v8  ;;  %v5691_v42 = vld [vmem:[#allocation20_spill] sm:$0xff] }
 0x19b   :  { %2945 = vmatpush.msrb.mxu0 %v5089_v18  ;;  %3045 = vmatpush.msrb.mxu2 %v5689_v39 }
 0x19c   :  { %3112 = vmatpush.msrb.mxu3 %v5023_v56  ;;  %2770 = vmatpush.msra.mxu1 %v5021_v37  ;;  %v5693_v37 = vld [vmem:[#allocation16_spill] sm:$0xff] }
 0x19d   :  { %2948 = vmatpush.msrb.mxu0 %v5104_v11  ;;  %3049 = vmatpush.msrb.mxu2 %v5690_v13 }
 0x19e   :  { %2994 = vmatpush.msrb.mxu1 %v5023_v56  ;;  %3114 = vmatpush.msrb.mxu3 %v5036_v16  ;;  %v5695_v56 = vld [vmem:[#allocation23_spill] sm:$0xff] }
 0x19f   :  { %2817 = vmatmul.f32.vlgmr.msra.gmra.mxu2 %v5691_v42  ;;  %2951 = vmatpush.msrb.mxu0 %v5117_v10 }
 0x1a0   :  { %2996 = vmatpush.msrb.mxu1 %v5036_v16  ;;  %3053 = vmatpush.msrb.mxu2 %v5692_v24  ;;  %v5694_v16 = vand.u32 4294901760, %v5117_v10 }
 0x1a1   :  { %3116 = vmatpush.msrb.mxu3 %v5051_v45  ;;  %2731 = vmatmul.f32.vlgmr.msra.gmra.mxu0 %v5625_v40 }
 0x1a2   :  { %2926 = vmatmul.f32.vlgmr.msra.gmra.mxu3 %v5693_v37  ;;  %2954 = vmatpush.msrb.mxu0 %v5130_v2  ;;  %v1869_v48 = vpop.f32.mrf.mxu2 }
 0x1a3   :  { %2998 = vmatpush.msrb.mxu1 %v5051_v45  ;;  %3057 = vmatpush.msrb.mxu2 %v2855_v53  ;;  %v5696_v45 = vld [vmem:[#allocation11_spill] sm:$0xff] }
 0x1a4   :  { %3118 = vmatpush.msrb.mxu3 %v5068_v47  ;;  %2772 = vmatmul.f32.vlgmr.msra.gmra.mxu1 %v5625_v40  ;;  %v1702_v40 = vpop.f32.mrf.mxu0 }
 0x1a5   :  { %2957 = vmatpush.msrb.mxu0 %v5143_v32  ;;  %3000 = vmatpush.msrb.mxu1 %v5068_v47  ;;  %v1811_v47 = vpop.f32.mrf.mxu1 }
 0x1a6   :  { %3061 = vmatpush.msrb.mxu2 %v5694_v16  ;;  %3120 = vmatpush.msrb.mxu3 %v5079_v19 }
 0x1a7   :  { %2960 = vmatpush.msrb.mxu0 %v5155_v59  ;;  %3002 = vmatpush.msrb.mxu1 %v5079_v19  ;;  %v1913_v19 = vpop.f32.mrf.mxu3 }
 0x1a8   :  { %3065 = vmatpush.msrb.mxu2 %v2867_v7  ;;  %3122 = vmatpush.msrb.mxu3 %v5091_v22  ;;  %v5698_v7 = vld [vmem:[#allocation19_spill] sm:$0xff] }
 0x1a9   :  { %2825 = vmatmul.f32.gmra.mxu2 %v5695_v56  ;;  %2963 = vmatpush.msrb.mxu0 %v5171_v55 }
 0x1aa   :  { %3004 = vmatpush.msrb.mxu1 %v5091_v22  ;;  %3069 = vmatpush.msrb.mxu2 %v2873_v23 }
 0x1ab   :  { %3124 = vmatpush.msrb.mxu3 %v5106_v12  ;;  %2735 = vmatmul.f32.gmra.mxu0 %v5688_v61 }
 0x1ac   :  { %2930 = vmatmul.f32.gmra.mxu3 %v5696_v45  ;;  %2966 = vmatpush.msrb.mxu0 %v5188_v58  ;;  %v1710_v18 = vpop.f32.mrf.mxu0  ;;  %v1874_v11 = vpop.f32.mrf.mxu2 }
 0x1ad   :  { %3006 = vmatpush.msrb.mxu1 %v5106_v12  ;;  %3073 = vmatpush.msrb.mxu2 %v2879_v6  ;;  %v1815_v22 = vpop.f32.mrf.mxu1  ;;  %v1812_v12 = vadd.f32 %v1811_v47, %v1702_v40 }
 0x1ae   :  { %3126 = vmatpush.msrb.mxu3 %v5119_v5  ;;  %2776 = vmatmul.f32.gmra.mxu1 %v5688_v61  ;;  %v1816_v2 = vadd.f32 %v1815_v22, %v1710_v18 }
 0x1af   :  { %2969 = vmatpush.msrb.mxu0 %v5201_v60  ;;  %3008 = vmatpush.msrb.mxu1 %v5119_v5  ;;  %v1919_v10 = vpop.f32.mrf.mxu3  ;;  %v1870_v5 = vadd.f32 %v1869_v48, %v1812_v12 }
 0x1b0   :  { %3077 = vmatpush.msrb.mxu2 %v2885_v34  ;;  %3128 = vmatpush.msrb.mxu3 %v5132_v57 }
 0x1b1   :  { %2972 = vmatpush.msrb.mxu0 %v5211_v49  ;;  %3010 = vmatpush.msrb.mxu1 %v5132_v57  ;;  %v5697_v57 = vld [vmem:[#allocation17_spill] sm:$0xff]  ;;  %v1914_v32 = vadd.f32 %v1913_v19, %v1870_v5 }
 0x1b2   :  { %3081 = vmatpush.msrb.mxu2 %v2891_v36  ;;  %3130 = vmatpush.msrb.mxu3 %v5148_v15 }
 0x1b3   :  { %2975 = vmatpush.msrb.mxu0 %v5227_v3  ;;  %3012 = vmatpush.msrb.mxu1 %v5148_v15  ;;  %v5699_v15 = vld [vmem:[#allocation21_spill] sm:$0xff] }
 0x1b4   :  { %3085 = vmatpush.msrb.mxu2 %v2897_v52  ;;  %3132 = vmatpush.msrb.mxu3 %v5165_v62  ;;  %v1988_v53 = vpop.f32.mrf.mxu0 }
 0x1b5   :  { %2978 = vmatpush.msrb.mxu0 %v5244_v9  ;;  %3014 = vmatpush.msrb.mxu1 %v5165_v62  ;;  %v2029_v59 = vpop.f32.mrf.mxu1  ;;  %v1875_v62 = vadd.f32 %v1874_v11, %v1816_v2  ;;  %v1989_v55 = vadd.f32 %v1988_v53, %v1914_v32 }
 0x1b6   :  { %3089 = vmatpush.msrb.mxu2 %v2903_v46  ;;  %3134 = vmatpush.msrb.mxu3 %v5178_v54  ;;  %v2074_v23 = vpop.f32.mrf.mxu2 }
 0x1b7   :  { %2981 = vmatpush.msrb.mxu0 %v5256_v63  ;;  %3016 = vmatpush.msrb.mxu1 %v5178_v54  ;;  %v1920_v58 = vadd.f32 %v1919_v10, %v1875_v62  ;;  %v2030_v34 = vadd.f32 %v2029_v59, %v1989_v55 }
 0x1b8   :  { %3093 = vmatpush.msrb.mxu2 %v2909_v14  ;;  %3136 = vmatpush.msrb.mxu3 %v5190_v38 }
 0x1b9   :  { %2984 = vmatmul.f32.vlgmr.msrb.gmra.mxu0 %v5697_v57  ;;  %3018 = vmatpush.msrb.mxu1 %v5190_v38  ;;  %v2183_v6 = vpop.f32.mrf.mxu3  ;;  %v5700_v38 = vld [vmem:[#allocation22_spill] sm:$0xff]  ;;  %v2075_v49 = vadd.f32 %v2074_v23, %v2030_v34 }
 0x1ba   :  { %3097 = vmatpush.msrb.mxu2 %v2915_v27  ;;  %3138 = vmatpush.msrb.mxu3 %v5206_v51 }
 0x1bb   :  { %3020 = vmatpush.msrb.mxu1 %v5206_v51  ;;  %v2184_v46 = vadd.f32 %v2183_v6, %v2075_v49 }
 0x1bc   :  { %3101 = vmatpush.msrb.mxu2 %v2921_v35  ;;  %3140 = vmatpush.msrb.mxu3 %v5221_v1 }
 0x1bd   :  { %3103 = vmatmul.f32.vlgmr.msrb.gmra.mxu2 %v5693_v37  ;;  %3022 = vmatpush.msrb.mxu1 %v5221_v1 }
 0x1be   :  { %3142 = vmatpush.msrb.mxu3 %v5234_v26 }
 0x1bf   :  { %3144 = vmatmul.f32.vlgmr.msrb.gmra.mxu3 %v5693_v37  ;;  %3024 = vmatpush.msrb.mxu1 %v5234_v26 }
 0x1c0   :  { %3028 = vmatmul.f32.vlgmr.msrb.gmra.mxu1 %v5698_v7  ;;  %v1992_v54 = vpop.f32.mrf.mxu0 }
 0x1c1   :  { %2989 = vmatmul.f32.gmra.mxu0 %v5699_v15  ;;  %v1993_v36 = vadd.f32 %v1992_v54, %v1920_v58 }
 0x1c5   :  { %3107 = vmatmul.f32.gmra.mxu2 %v5696_v45 }
 0x1c7   :  { %3148 = vmatmul.f32.gmra.mxu3 %v5696_v45 }
 0x1c8   :  { %3034 = vmatmul.f32.gmra.mxu1 %v5700_v38 }
 0x1c9   :  { %v2033_v60 = vpop.f32.mrf.mxu1 }
 0x1ca   :  { %v2082_v51 = vpop.f32.mrf.mxu2  ;;  %v2034_v1 = vadd.f32 %v2033_v60, %v1993_v36  ;;  %v2241_v3 = vpop.f32.mrf.mxu0 }
 0x1cb   :  { %v2242_v26 = vadd.f32 %v2241_v3, %v2184_v46 }
 0x1cc   :  { %v2083_v9 = vadd.f32 %v2082_v51, %v2034_v1 }
 0x1cd   :  { %v2187_v52 = vpop.f32.mrf.mxu3 }
 0x1ce   :  { %v2188_v28 = vadd.f32 %v2187_v52, %v2083_v9 }
 0x1d4   :  { %v2285_v14 = vpop.f32.mrf.mxu1  ;;  %v2360_v63 = vpop.f32.mrf.mxu2 }
 0x1d5   :  { %v2286_v27 = vadd.f32 %v2285_v14, %v2242_v26 }
 0x1d7   :  { %v2361_v25 = vadd.f32 %v2360_v63, %v2286_v27  ;;  %v2401_v35 = vpop.f32.mrf.mxu3 }
 0x1d8   :  { %v2246_v44 = vpop.f32.mrf.mxu0 }
 0x1d9   :  { %v2402_v50 = vadd.f32 %v2401_v35, %v2361_v25  ;;  %v2247_v43 = vadd.f32 %v2246_v44, %v2188_v28 }
 0x1db   :  { %3154 = vst [vmem:[#allocation7 + $0x10] sm:$0xff] %v2402_v50 }
 0x1dd   :  { %v2291_v29 = vpop.f32.mrf.mxu1 }
 0x1de   :  { %v2292_v30 = vadd.f32 %v2291_v29, %v2247_v43  ;;  %v2364_v17 = vpop.f32.mrf.mxu2 }
 0x1e0   :  { %v2365_v21 = vadd.f32 %v2364_v17, %v2292_v30 }
 0x1e1   :  { %v2405_v33 = vpop.f32.mrf.mxu3 }
 0x1e2   :  { %v2406_v20 = vadd.f32 %v2405_v33, %v2365_v21 }
 0x1e4   :  { %3158 = vst [vmem:[#allocation7 + $0x30] sm:$0xff] %v2406_v20 }
 0x208   :  { %v2446_v4 = vpop.f32.mrf.mxu0 }
 0x20b   :  { %v2555_v0 = vpop.f32.mrf.mxu1 }
 0x20c   :  { %v2613_v31 = vpop.f32.mrf.mxu2  ;;  %v2556_v39 = vadd.f32 %v2555_v0, %v2446_v4 }
 0x20e   :  { %v2614_v24 = vadd.f32 %v2613_v31, %v2556_v39 }
 0x20f   :  { %v2657_v41 = vpop.f32.mrf.mxu3 }
 0x210   :  { %v2658_v16 = vadd.f32 %v2657_v41, %v2614_v24 }
 0x213   :  { %v2454_v8 = vpop.f32.mrf.mxu0 }
 0x216   :  { %v2559_v61 = vpop.f32.mrf.mxu1  ;;  %v2618_v13 = vpop.f32.mrf.mxu2 }
 0x217   :  { %v2560_v56 = vadd.f32 %v2559_v61, %v2454_v8 }
 0x219   :  { %v2663_v37 = vpop.f32.mrf.mxu3  ;;  %v2619_v45 = vadd.f32 %v2618_v13, %v2560_v56 }
 0x21b   :  { %v2664_v22 = vadd.f32 %v2663_v37, %v2619_v45 }
 0x21e   :  { %v2732_v42 = vpop.f32.mrf.mxu0 }
 0x21f   :  { %v2733_v47 = vadd.f32 %v2732_v42, %v2658_v16 }
 0x221   :  { %v2773_v40 = vpop.f32.mrf.mxu1 }
 0x222   :  { %v2818_v48 = vpop.f32.mrf.mxu2  ;;  %v2774_v11 = vadd.f32 %v2773_v40, %v2733_v47 }
 0x224   :  { %v2819_v57 = vadd.f32 %v2818_v48, %v2774_v11 }
 0x225   :  { %v2927_v18 = vpop.f32.mrf.mxu3 }
 0x226   :  { %v2928_v2 = vadd.f32 %v2927_v18, %v2819_v57 }
 0x228   :  { %v2736_v19 = vpop.f32.mrf.mxu0 }
 0x229   :  { %v2737_v10 = vadd.f32 %v2736_v19, %v2664_v22 }
 0x22b   :  { %v2777_v12 = vpop.f32.mrf.mxu1 }
 0x22c   :  { %v2826_v53 = vpop.f32.mrf.mxu2  ;;  %v2778_v7 = vadd.f32 %v2777_v12, %v2737_v10 }
 0x22e   :  { %v2827_v23 = vadd.f32 %v2826_v53, %v2778_v7 }
 0x22f   :  { %v2931_v32 = vpop.f32.mrf.mxu3 }
 0x230   :  { %v2932_v58 = vadd.f32 %v2931_v32, %v2827_v23 }
 0x236   :  { %v2985_v5 = vpop.f32.mrf.mxu0 }
 0x237   :  { %v2986_v15 = vadd.f32 %v2985_v5, %v2928_v2 }
 0x23d   :  { %v3029_v59 = vpop.f32.mrf.mxu1 }
 0x23e   :  { %v3030_v62 = vadd.f32 %v3029_v59, %v2986_v15  ;;  %v2990_v6 = vpop.f32.mrf.mxu0 }
 0x23f   :  { %v2991_v60 = vadd.f32 %v2990_v6, %v2932_v58 }
 0x240   :  { %v3104_v55 = vpop.f32.mrf.mxu2 }
 0x241   :  { %v3105_v54 = vadd.f32 %v3104_v55, %v3030_v62 }
 0x242   :  { %v3145_v38 = vpop.f32.mrf.mxu3 }
 0x243   :  { %v3146_v34 = vadd.f32 %v3145_v38, %v3105_v54 }
 0x245   :  { %3155 = vst [vmem:[#allocation7 + $0x18] sm:$0xff] %v3146_v34  ;;  %v3035_v51 = vpop.f32.mrf.mxu1 }
 0x246   :  { %v3036_v36 = vadd.f32 %v3035_v51, %v2991_v60 }
 0x248   :  { %v3108_v49 = vpop.f32.mrf.mxu2 }
 0x249   :  { %v3109_v52 = vadd.f32 %v3108_v49, %v3036_v36 }
 0x24a   :  { %v3149_v1 = vpop.f32.mrf.mxu3 }
 0x24b   :  { %v3150_v3 = vadd.f32 %v3149_v1, %v3109_v52 }
 0x24d   :  { %3159 = vst [vmem:[#allocation7 + $0x38] sm:$0xff] %v3150_v3 }
 0x24e   :  { %3172 = dma.vmem_to_hbm [thread:$0]  %s3165_s1, 1024, %s3167_s25, [#allocation4], %s3269_s21, %s3269_s21, %s3270_s22  }
 0x24f   :  { %3263 = dma.done.wait [#allocation4], 1024  }
 0x250   :  { %3264 = vsyncadd [#allocation4], 4294966272 }
 0x251   :  { %3177 = vsyncpa [#allocation3], 1 }
 0x252   :  { %3178 = vsyncpa [#allocation6], 1 }
 0x253   :  { %3179 = vsyncpa [#allocation4], 1 }

</bundles_post_ra>
